<compile_context>
chip_gen: v5e
topology: v5e:2x2
jax: 0.10.0
libtpu: 0.0.40
codegen_flags: <defaults>
</compile_context>

<pallas_src>
import jax
import jax.numpy as jnp
from jax.experimental import pallas as pl
from jax.experimental.pallas import tpu as pltpu

CIO = 8       # compact channel pad for HBM-resident input/output (3 -> 8)
CMID = 128    # in-kernel lane width for intermediate activations
TM_DEFAULT = 512  # row tile (sweet spot per HBM-roofline measurements)


def _generator_kernel(x_ref, w1, b1, w2, b2, w3, b3, w4, b4, o_ref):
    # x_ref: (TM, 8)        w1: (8, 128)    b1: (1, 128)
    # h    : (TM, 128)      w2: (128, 128)  b2: (1, 128)
    #                       w3: (128, 128)  b3: (1, 128)
    # o_ref: (TM, 8)        w4: (128, 8)    b4: (1, 8)
    h = jnp.tanh(jnp.dot(x_ref[...], w1[...],
                         preferred_element_type=jnp.float32) + b1[...])
    h = jnp.tanh(jnp.dot(h, w2[...],
                         preferred_element_type=jnp.float32) + b2[...])
    h = jnp.tanh(jnp.dot(h, w3[...],
                         preferred_element_type=jnp.float32) + b3[...])
    h = jnp.tanh(jnp.dot(h, w4[...],
                         preferred_element_type=jnp.float32) + b4[...])
    o_ref[...] = h.astype(o_ref.dtype)


def _pad_weight(w, rows, cols):
    # w: (Cout, Cin) torch conv2d 1x1 weight (squeezed).  Return (rows, cols)
    # matrix W s.t. y = x @ W  ==  conv1x1(x); padding is zero.
    cout, cin = w.shape
    wp = jnp.zeros((rows, cols), jnp.float32)
    return wp.at[:cin, :cout].set(w.T)


def _pad_bias(b, cols):
    bp = jnp.zeros((1, cols), jnp.float32)
    return bp.at[0, :b.shape[0]].set(b)


def _round_up(x, n):
    return ((x + n - 1) // n) * n


def generator_forward(x_nchw, params, *, tm=None):
    """x_nchw: (N, 3, H, W) float32 -> (N, 3, H, W) float32."""
    n, cin, h, w = x_nchw.shape
    assert cin == 3
    m = n * h * w

    if tm is None:
        # Single block for tiny inputs; 512-row tiles (and >=2 grid blocks for
        # v7x megacore) once the input is large enough.
        tm = TM_DEFAULT if m > TM_DEFAULT else max(8, _round_up(m, 8))
    m_pad = _round_up(m, tm)

    # NCHW -> (M, 3) rows; pad channels only to 8 and rows to a tile multiple.
    x_rows = jnp.transpose(x_nchw, (0, 2, 3, 1)).reshape(m, cin)
    x_pad = jnp.zeros((m_pad, CIO), jnp.float32).at[:m, :cin].set(x_rows)

    (w1, b1), (w2, b2), (w3, b3), (w4, b4) = params
    w1p = _pad_weight(w1, CIO, CMID)    # (8, 128)
    w2p = _pad_weight(w2, CMID, CMID)   # (128, 128)
    w3p = _pad_weight(w3, CMID, CMID)   # (128, 128)
    w4p = _pad_weight(w4, CMID, CIO)    # (128, 8)
    b1p = _pad_bias(b1, CMID)
    b2p = _pad_bias(b2, CMID)
    b3p = _pad_bias(b3, CMID)
    b4p = _pad_bias(b4, CIO)

    grid = (m_pad // tm,)

    out_pad = pl.pallas_call(
        _generator_kernel,
        out_shape=jax.ShapeDtypeStruct((m_pad, CIO), jnp.float32),
        grid_spec=pltpu.PrefetchScalarGridSpec(
            num_scalar_prefetch=0,
            grid=grid,
            in_specs=[
                pl.BlockSpec((tm, CIO), lambda i: (i, 0)),      # x rows
                pl.BlockSpec((CIO, CMID), lambda i: (0, 0)),    # w1
                pl.BlockSpec((1, CMID), lambda i: (0, 0)),      # b1
                pl.BlockSpec((CMID, CMID), lambda i: (0, 0)),   # w2
                pl.BlockSpec((1, CMID), lambda i: (0, 0)),      # b2
                pl.BlockSpec((CMID, CMID), lambda i: (0, 0)),   # w3
                pl.BlockSpec((1, CMID), lambda i: (0, 0)),      # b3
                pl.BlockSpec((CMID, CIO), lambda i: (0, 0)),    # w4
                pl.BlockSpec((1, CIO), lambda i: (0, 0)),       # b4
            ],
            out_specs=pl.BlockSpec((tm, CIO), lambda i: (i, 0)),
        ),
        compiler_params=pltpu.CompilerParams(
            dimension_semantics=("parallel",)),
    )(x_pad, w1p, b1p, w2p, b2p, w3p, b3p, w4p, b4p)

    # Padded rows/channels are garbage-but-harmless / exactly zero; slice off.
    out_rows = out_pad[:m, :3]
    return jnp.transpose(out_rows.reshape(n, h, w, 3), (0, 3, 1, 2))


def _init_params(key):
    # Deterministic synthetic init matching nn.Conv2d(cin, cout, 1) shapes
    # (kernel squeezed to (cout, cin)); uniform(-1/sqrt(cin), 1/sqrt(cin)).
    shapes = [(9, 3), (27, 9), (9, 27), (3, 9)]
    params = []
    for (cout, cin) in shapes:
        key, kw, kb = jax.random.split(key, 3)
        bound = 1.0 / jnp.sqrt(float(cin))
        w = jax.random.uniform(kw, (cout, cin), jnp.float32, -bound, bound)
        b = jax.random.uniform(kb, (cout,), jnp.float32, -bound, bound)
        params.append((w, b))
    return params


def _reference_forward(x_nchw, params):
    # Pure-JAX reference: 1x1 conv == einsum over channel dim, then tanh.
    h = x_nchw
    for w, b in params:
        h = jnp.einsum('nchw,oc->nohw', h, w) + b[None, :, None, None]
        h = jnp.tanh(h)
    return h


if __name__ == "__main__":
    key = jax.random.PRNGKey(0)
    kx, kp = jax.random.split(key)
    x = jax.random.normal(kx, (2, 3, 16, 16), jnp.float32)
    params = _init_params(kp)

    out = generator_forward(x, params)
    out = jax.block_until_ready(out)

    ref = _reference_forward(x, params)
    assert out.shape == (2, 3, 16, 16)
    assert jnp.allclose(out, ref, atol=1e-5, rtol=1e-5)
    print("KERNEL_OK")
</pallas_src>

<mosaic_0001>
module attributes {stable_mosaic.version = 11 : i64} {
  func.func @_generator_kernel(%arg0: i32, %arg1: memref<512x8xf32, #tpu.memory_space<vmem>>, %arg2: memref<8x128xf32, #tpu.memory_space<vmem>>, %arg3: memref<1x128xf32, #tpu.memory_space<vmem>>, %arg4: memref<128x128xf32, #tpu.memory_space<vmem>>, %arg5: memref<1x128xf32, #tpu.memory_space<vmem>>, %arg6: memref<128x128xf32, #tpu.memory_space<vmem>>, %arg7: memref<1x128xf32, #tpu.memory_space<vmem>>, %arg8: memref<128x8xf32, #tpu.memory_space<vmem>>, %arg9: memref<1x8xf32, #tpu.memory_space<vmem>>, %arg10: memref<512x8xf32, #tpu.memory_space<vmem>>) attributes {dimension_semantics = [#tpu.dimension_semantics<parallel>], iteration_bounds = array<i64: 1>, scalar_prefetch = 0 : i64, scratch_operands = 0 : i64, tpu.core_type = #tpu.core_type<tc>, window_params = [{transform_indices = @transform_0, window_bounds = array<i64: 512, 8>}, {pipeline_mode = #tpu.pipeline_mode<synchronous>, transform_indices = @transform_1, window_bounds = array<i64: 8, 128>}, {pipeline_mode = #tpu.pipeline_mode<synchronous>, transform_indices = @transform_2, window_bounds = array<i64: 1, 128>}, {pipeline_mode = #tpu.pipeline_mode<synchronous>, transform_indices = @transform_3, window_bounds = array<i64: 128, 128>}, {pipeline_mode = #tpu.pipeline_mode<synchronous>, transform_indices = @transform_4, window_bounds = array<i64: 1, 128>}, {pipeline_mode = #tpu.pipeline_mode<synchronous>, transform_indices = @transform_5, window_bounds = array<i64: 128, 128>}, {pipeline_mode = #tpu.pipeline_mode<synchronous>, transform_indices = @transform_6, window_bounds = array<i64: 1, 128>}, {pipeline_mode = #tpu.pipeline_mode<synchronous>, transform_indices = @transform_7, window_bounds = array<i64: 128, 8>}, {pipeline_mode = #tpu.pipeline_mode<synchronous>, transform_indices = @transform_8, window_bounds = array<i64: 1, 8>}, {transform_indices = @transform_9, window_bounds = array<i64: 512, 8>}]} {
    %c0 = arith.constant 0 : index
    %c0_0 = arith.constant 0 : index
    %0 = vector.load %arg1[%c0, %c0_0] : memref<512x8xf32, #tpu.memory_space<vmem>>, vector<512x8xf32>
    %c0_1 = arith.constant 0 : index
    %c0_2 = arith.constant 0 : index
    %1 = vector.load %arg2[%c0_1, %c0_2] : memref<8x128xf32, #tpu.memory_space<vmem>>, vector<8x128xf32>
    %cst = arith.constant dense<0.000000e+00> : vector<512x128xf32>
    %2 = tpu.matmul %0, %1, %cst {dimension_numbers = #tpu.dot_dimension_numbers<[1], [0], [0], [1], [0, 0, 1, 1], [], []>} : vector<512x8xf32>, vector<8x128xf32>, vector<512x128xf32> -> vector<512x128xf32>
    %c0_3 = arith.constant 0 : index
    %c0_4 = arith.constant 0 : index
    %3 = vector.load %arg3[%c0_3, %c0_4] : memref<1x128xf32, #tpu.memory_space<vmem>>, vector<1x128xf32>
    %4 = vector.broadcast %3 : vector<1x128xf32> to vector<512x128xf32>
    %5 = arith.addf %2, %4 : vector<512x128xf32>
    %6 = math.tanh %5 : vector<512x128xf32>
    %c0_5 = arith.constant 0 : index
    %c0_6 = arith.constant 0 : index
    %7 = vector.load %arg4[%c0_5, %c0_6] : memref<128x128xf32, #tpu.memory_space<vmem>>, vector<128x128xf32>
    %cst_7 = arith.constant dense<0.000000e+00> : vector<512x128xf32>
    %8 = tpu.matmul %6, %7, %cst_7 {dimension_numbers = #tpu.dot_dimension_numbers<[1], [0], [0], [1], [0, 0, 1, 1], [], []>} : vector<512x128xf32>, vector<128x128xf32>, vector<512x128xf32> -> vector<512x128xf32>
    %c0_8 = arith.constant 0 : index
    %c0_9 = arith.constant 0 : index
    %9 = vector.load %arg5[%c0_8, %c0_9] : memref<1x128xf32, #tpu.memory_space<vmem>>, vector<1x128xf32>
    %10 = vector.broadcast %9 : vector<1x128xf32> to vector<512x128xf32>
    %11 = arith.addf %8, %10 : vector<512x128xf32>
    %12 = math.tanh %11 : vector<512x128xf32>
    %c0_10 = arith.constant 0 : index
    %c0_11 = arith.constant 0 : index
    %13 = vector.load %arg6[%c0_10, %c0_11] : memref<128x128xf32, #tpu.memory_space<vmem>>, vector<128x128xf32>
    %cst_12 = arith.constant dense<0.000000e+00> : vector<512x128xf32>
    %14 = tpu.matmul %12, %13, %cst_12 {dimension_numbers = #tpu.dot_dimension_numbers<[1], [0], [0], [1], [0, 0, 1, 1], [], []>} : vector<512x128xf32>, vector<128x128xf32>, vector<512x128xf32> -> vector<512x128xf32>
    %c0_13 = arith.constant 0 : index
    %c0_14 = arith.constant 0 : index
    %15 = vector.load %arg7[%c0_13, %c0_14] : memref<1x128xf32, #tpu.memory_space<vmem>>, vector<1x128xf32>
    %16 = vector.broadcast %15 : vector<1x128xf32> to vector<512x128xf32>
    %17 = arith.addf %14, %16 : vector<512x128xf32>
    %18 = math.tanh %17 : vector<512x128xf32>
    %c0_15 = arith.constant 0 : index
    %c0_16 = arith.constant 0 : index
    %19 = vector.load %arg8[%c0_15, %c0_16] : memref<128x8xf32, #tpu.memory_space<vmem>>, vector<128x8xf32>
    %cst_17 = arith.constant dense<0.000000e+00> : vector<512x8xf32>
    %20 = tpu.matmul %18, %19, %cst_17 {dimension_numbers = #tpu.dot_dimension_numbers<[1], [0], [0], [1], [0, 0, 1, 1], [], []>} : vector<512x128xf32>, vector<128x8xf32>, vector<512x8xf32> -> vector<512x8xf32>
    %c0_18 = arith.constant 0 : index
    %c0_19 = arith.constant 0 : index
    %21 = vector.load %arg9[%c0_18, %c0_19] : memref<1x8xf32, #tpu.memory_space<vmem>>, vector<1x8xf32>
    %22 = vector.broadcast %21 : vector<1x8xf32> to vector<512x8xf32>
    %23 = arith.addf %20, %22 : vector<512x8xf32>
    %24 = math.tanh %23 : vector<512x8xf32>
    %c0_20 = arith.constant 0 : index
    %c0_21 = arith.constant 0 : index
    %25 = vector.load %arg10[%c0_20, %c0_21] : memref<512x8xf32, #tpu.memory_space<vmem>>, vector<512x8xf32>
    tpu.vector_store %arg10[%c0_20, %c0_21], %24 {strides = array<i32>} : memref<512x8xf32, #tpu.memory_space<vmem>>, vector<512x8xf32>,
    return
  }
  func.func @transform_0(%arg0: i32) -> (i32, i32) {
    %c0_i32 = arith.constant 0 : i32
    %c0_i32_0 = arith.constant 0 : i32
    return %arg0, %c0_i32 : i32, i32
  }
  func.func @transform_1(%arg0: i32) -> (i32, i32) {
    %c0_i32 = arith.constant 0 : i32
    %c0_i32_0 = arith.constant 0 : i32
    %c0_i32_1 = arith.constant 0 : i32
    return %c0_i32, %c0_i32_0 : i32, i32
  }
  func.func @transform_2(%arg0: i32) -> (i32, i32) {
    %c0_i32 = arith.constant 0 : i32
    %c0_i32_0 = arith.constant 0 : i32
    %c0_i32_1 = arith.constant 0 : i32
    return %c0_i32, %c0_i32_0 : i32, i32
  }
  func.func @transform_3(%arg0: i32) -> (i32, i32) {
    %c0_i32 = arith.constant 0 : i32
    %c0_i32_0 = arith.constant 0 : i32
    %c0_i32_1 = arith.constant 0 : i32
    return %c0_i32, %c0_i32_0 : i32, i32
  }
  func.func @transform_4(%arg0: i32) -> (i32, i32) {
    %c0_i32 = arith.constant 0 : i32
    %c0_i32_0 = arith.constant 0 : i32
    %c0_i32_1 = arith.constant 0 : i32
    return %c0_i32, %c0_i32_0 : i32, i32
  }
  func.func @transform_5(%arg0: i32) -> (i32, i32) {
    %c0_i32 = arith.constant 0 : i32
    %c0_i32_0 = arith.constant 0 : i32
    %c0_i32_1 = arith.constant 0 : i32
    return %c0_i32, %c0_i32_0 : i32, i32
  }
  func.func @transform_6(%arg0: i32) -> (i32, i32) {
    %c0_i32 = arith.constant 0 : i32
    %c0_i32_0 = arith.constant 0 : i32
    %c0_i32_1 = arith.constant 0 : i32
    return %c0_i32, %c0_i32_0 : i32, i32
  }
  func.func @transform_7(%arg0: i32) -> (i32, i32) {
    %c0_i32 = arith.constant 0 : i32
    %c0_i32_0 = arith.constant 0 : i32
    %c0_i32_1 = arith.constant 0 : i32
    return %c0_i32, %c0_i32_0 : i32, i32
  }
  func.func @transform_8(%arg0: i32) -> (i32, i32) {
    %c0_i32 = arith.constant 0 : i32
    %c0_i32_0 = arith.constant 0 : i32
    %c0_i32_1 = arith.constant 0 : i32
    return %c0_i32, %c0_i32_0 : i32, i32
  }
  func.func @transform_9(%arg0: i32) -> (i32, i32) {
    %c0_i32 = arith.constant 0 : i32
    %c0_i32_0 = arith.constant 0 : i32
    return %arg0, %c0_i32 : i32, i32
  }
}

</mosaic_0001>

<bundles_post_ra>
// kernel: tpu_custom_call.1
= control target key start
LH: loop header
LB: loop body
LE: loop exit
PB: predicated region body
PF: predicated region fallthrough
CT: control target
= control target key end

     0   :  { %vm101_vm0 = vcmask 64512   ;;  %s3257_s1 = inlined_call_operand.vmem [shape: f32[8,128], index: 1, kind: input, shape index: {}]   ;;  %s3258_s0 = inlined_call_operand.vmem [shape: f32[512,8], index: 0, kind: input, shape index: {}]   ;;  %s3259_s3 = inlined_call_operand.vmem [shape: f32[128,128], index: 3, kind: input, shape index: {}]   ;;  %s3260_s2 = inlined_call_operand.vmem [shape: f32[1,128], index: 2, kind: input, shape index: {}]   ;;  %s3261_s4 = inlined_call_operand.vmem [shape: f32[1,128], index: 4, kind: input, shape index: {}]   ;;  %s3262_s5 = inlined_call_operand.vmem [shape: f32[128,128], index: 5, kind: input, shape index: {}]   ;;  %s3263_s6 = inlined_call_operand.vmem [shape: f32[1,128], index: 6, kind: input, shape index: {}]   ;;  %s3264_s7 = inlined_call_operand.vmem [shape: f32[128,8], index: 7, kind: input, shape index: {}]   ;;  %s3265_s8 = inlined_call_operand.vmem [shape: f32[1,8], index: 8, kind: input, shape index: {}]   ;;  %s3266_s9 = inlined_call_operand.vmem [shape: f32[512,8], index: 9, kind: output, shape index: {}]  }
   0x1   :  { %v96_v0 = vld [vmem:[%s3257_s1] sm:$0xff]  ;;  %v582_v2 = vld [vmem:[%s3259_s3 + $0x78] sm:$0xff]  ;;  %v581_v3 = vld [vmem:[%s3259_s3 + $0x70] sm:$0xff] }
   0x2   :  { %v32_v1 = vld [vmem:[%s3258_s0] sm:$0xff]  ;;  %309 = vmatpush.msra.mxu0 %v96_v0  ;;  %1578 = vmatpush.msra.mxu1 %v582_v2  ;;  %v33_v4 = vld [vmem:[%s3258_s0 + $0x8] sm:$0xff]  ;;  %v34_v5 = vld [vmem:[%s3258_s0 + $0x10] sm:$0xff] }
   0x3   :  { %1514 = vmatmul.msk.f32.vlgmr.msra.gmra.mxu0 %vm101_vm0, %v32_v1  ;;  %v35_v6 = vld [vmem:[%s3258_s0 + $0x18] sm:$0xff]  ;;  %v36_v7 = vld [vmem:[%s3258_s0 + $0x20] sm:$0xff]  ;;  %v580_v8 = vld [vmem:[%s3259_s3 + $0x68] sm:$0xff] }
   0x4   :  { %587 = vmatpush.msrb.mxu0 %v582_v2  ;;  %1579 = vmatpush.msra.mxu1 %v581_v3  ;;  %v37_v9 = vld [vmem:[%s3258_s0 + $0x28] sm:$0xff]  ;;  %v38_v10 = vld [vmem:[%s3258_s0 + $0x30] sm:$0xff]  ;;  %v39_v11 = vld [vmem:[%s3258_s0 + $0x38] sm:$0xff] }
   0x5   :  { %v40_v12 = vld [vmem:[%s3258_s0 + $0x40] sm:$0xff]  ;;  %v41_v14 = vld [vmem:[%s3258_s0 + $0x48] sm:$0xff]  ;;  %v42_v15 = vld [vmem:[%s3258_s0 + $0x50] sm:$0xff] }
   0x6   :  { %588 = vmatpush.msrb.mxu0 %v581_v3  ;;  %1580 = vmatpush.msra.mxu1 %v580_v8  ;;  %v579_v13 = vld [vmem:[%s3259_s3 + $0x60] sm:$0xff]  ;;  %v43_v16 = vld [vmem:[%s3258_s0 + $0x58] sm:$0xff]  ;;  %v577_v18 = vld [vmem:[%s3259_s3 + $0x50] sm:$0xff] }
   0x7   :  { %v578_v17 = vld [vmem:[%s3259_s3 + $0x58] sm:$0xff]  ;;  %v576_v19 = vld [vmem:[%s3259_s3 + $0x48] sm:$0xff]  ;;  %v44_v20 = vld [vmem:[%s3258_s0 + $0x60] sm:$0xff] }
   0x8   :  { %589 = vmatpush.msrb.mxu0 %v580_v8  ;;  %1581 = vmatpush.msra.mxu1 %v579_v13  ;;  %v575_v21 = vld [vmem:[%s3259_s3 + $0x40] sm:$0xff]  ;;  %v574_v22 = vld [vmem:[%s3259_s3 + $0x38] sm:$0xff]  ;;  %v573_v23 = vld [vmem:[%s3259_s3 + $0x30] sm:$0xff] }
   0x9   :  { %v572_v24 = vld [vmem:[%s3259_s3 + $0x28] sm:$0xff]  ;;  %v571_v26 = vld [vmem:[%s3259_s3 + $0x20] sm:$0xff]  ;;  %v570_v27 = vld [vmem:[%s3259_s3 + $0x18] sm:$0xff] }
   0xa   :  { %590 = vmatpush.msrb.mxu0 %v579_v13  ;;  %1582 = vmatpush.msra.mxu1 %v578_v17  ;;  %v45_v25 = vld [vmem:[%s3258_s0 + $0x68] sm:$0xff]  ;;  %v569_v28 = vld [vmem:[%s3259_s3 + $0x10] sm:$0xff]  ;;  %v567_v31 = vld [vmem:[%s3259_s3] sm:$0xff] }
   0xb   :  { %1515 = vmatmul.msk.f32.gmra.mxu0 %vm101_vm0, %v33_v4  ;;  %v568_v29 = vld [vmem:[%s3259_s3 + $0x8] sm:$0xff]  ;;  %v46_v30 = vld [vmem:[%s3258_s0 + $0x70] sm:$0xff]  ;;  %v47_v32 = vld [vmem:[%s3258_s0 + $0x78] sm:$0xff] }
   0xc   :  { %591 = vmatpush.msrb.mxu0 %v578_v17  ;;  %1583 = vmatpush.msra.mxu1 %v577_v18  ;;  %v48_v34 = vld [vmem:[%s3258_s0 + $0x80] sm:$0xff]  ;;  %v49_v37 = vld [vmem:[%s3258_s0 + $0x88] sm:$0xff]  ;;  %v50_v40 = vld [vmem:[%s3258_s0 + $0x90] sm:$0xff] }
   0xd   :  { %v2287_v35 = vld [vmem:[%s3260_s2] ss:$0 sm:$0xff]  ;;  %v51_v44 = vld [vmem:[%s3258_s0 + $0x98] sm:$0xff]  ;;  %v53_v52 = vld [vmem:[%s3258_s0 + $0xa8] sm:$0xff] }
   0xe   :  { %592 = vmatpush.msrb.mxu0 %v577_v18  ;;  %1584 = vmatpush.msra.mxu1 %v576_v19  ;;  %v52_v48 = vld [vmem:[%s3258_s0 + $0xa0] sm:$0xff]  ;;  %v54_v56 = vld [vmem:[%s3258_s0 + $0xb0] sm:$0xff]  ;;  %v55_v60 = vld [vmem:[%s3258_s0 + $0xb8] sm:$0xff] }
   0xf   :  { %v56_v0 = vld [vmem:[%s3258_s0 + $0xc0] sm:$0xff]  ;;  %v57_v4 = vld [vmem:[%s3258_s0 + $0xc8] sm:$0xff]  ;;  %v58_v8 = vld [vmem:[%s3258_s0 + $0xd0] sm:$0xff] }
  0x10   :  { %593 = vmatpush.msrb.mxu0 %v576_v19  ;;  %1585 = vmatpush.msra.mxu1 %v575_v21 }
  0x12   :  { %594 = vmatpush.msrb.mxu0 %v575_v21  ;;  %1586 = vmatpush.msra.mxu1 %v574_v22 }
  0x13   :  { %1516 = vmatmul.msk.f32.gmra.mxu0 %vm101_vm0, %v34_v5 }
  0x14   :  { %595 = vmatpush.msrb.mxu0 %v574_v22  ;;  %1587 = vmatpush.msra.mxu1 %v573_v23 }
  0x16   :  { %596 = vmatpush.msrb.mxu0 %v573_v23  ;;  %1588 = vmatpush.msra.mxu1 %v572_v24 }
  0x18   :  { %597 = vmatpush.msrb.mxu0 %v572_v24  ;;  %1589 = vmatpush.msra.mxu1 %v571_v26  ;;  %v62_v24 = vld [vmem:[%s3258_s0 + $0xf0] sm:$0xff] }
  0x1a   :  { %598 = vmatpush.msrb.mxu0 %v571_v26  ;;  %1590 = vmatpush.msra.mxu1 %v570_v27 }
  0x1b   :  { %1517 = vmatmul.msk.f32.gmra.mxu0 %vm101_vm0, %v35_v6 }
  0x1c   :  { %599 = vmatpush.msrb.mxu0 %v570_v27  ;;  %1591 = vmatpush.msra.mxu1 %v569_v28 }
  0x1e   :  { %600 = vmatpush.msrb.mxu0 %v569_v28  ;;  %1592 = vmatpush.msra.mxu1 %v568_v29  ;;  %v63_v28 = vld [vmem:[%s3258_s0 + $0xf8] sm:$0xff] }
  0x20   :  { %601 = vmatpush.msrb.mxu0 %v568_v29  ;;  %1593 = vmatpush.msra.mxu1 %v567_v31 }
  0x22   :  { %602 = vmatpush.msrb.mxu0 %v567_v31 }
  0x23   :  { %1518 = vmatmul.msk.f32.gmra.mxu0 %vm101_vm0, %v36_v7 }
  0x2b   :  { %1519 = vmatmul.msk.f32.gmra.mxu0 %vm101_vm0, %v37_v9 }
  0x33   :  { %1520 = vmatmul.msk.f32.gmra.mxu0 %vm101_vm0, %v38_v10 }
  0x3b   :  { %1521 = vmatmul.msk.f32.gmra.mxu0 %vm101_vm0, %v39_v11 }
  0x43   :  { %1522 = vmatmul.msk.f32.gmra.mxu0 %vm101_vm0, %v40_v12  ;;  %v59_v12 = vld [vmem:[%s3258_s0 + $0xd8] sm:$0xff] }
  0x4b   :  { %1523 = vmatmul.msk.f32.gmra.mxu0 %vm101_vm0, %v41_v14 }
  0x53   :  { %1524 = vmatmul.msk.f32.gmra.mxu0 %vm101_vm0, %v42_v15 }
  0x5b   :  { %1525 = vmatmul.msk.f32.gmra.mxu0 %vm101_vm0, %v43_v16  ;;  %v60_v16 = vld [vmem:[%s3258_s0 + $0xe0] sm:$0xff] }
  0x63   :  { %1526 = vmatmul.msk.f32.gmra.mxu0 %vm101_vm0, %v44_v20  ;;  %v61_v20 = vld [vmem:[%s3258_s0 + $0xe8] sm:$0xff] }
  0x6b   :  { %1527 = vmatmul.msk.f32.gmra.mxu0 %vm101_vm0, %v45_v25 }
  0x73   :  { %1528 = vmatmul.msk.f32.gmra.mxu0 %vm101_vm0, %v46_v30 }
  0x7b   :  { %1529 = vmatmul.msk.f32.gmra.mxu0 %vm101_vm0, %v47_v32  ;;  %v64_v32 = vld [vmem:[%s3258_s0 + $0x100] sm:$0xff] }
  0x80   :  { %v2278_v33 = vpop.f32.mrf.mxu0 }
  0x83   :  { %1530 = vmatmul.msk.f32.gmra.mxu0 %vm101_vm0, %v48_v34 }
  0x88   :  { %v314_v36 = vpop.f32.mrf.mxu0 }
  0x89   :  { %v315_v38 = vadd.f32 %v2287_v35, %v314_v36 }
  0x8b   :  { %1598 = vtanh.f32 %v315_v38  ;;  %1531 = vmatmul.msk.f32.gmra.mxu0 %vm101_vm0, %v49_v37  ;;  %v65_v38 = vld [vmem:[%s3258_s0 + $0x108] sm:$0xff] }
  0x90   :  { %v317_v39 = vpop.f32.mrf.mxu0 }
  0x91   :  { %v1599_v41 = vpop.eup %1598  ;;  %v318_v42 = vadd.f32 %v2287_v35, %v317_v39 }
  0x92   :  { %606 = vmatmul.f32.vlgmr.msra.gmra.mxu1 %v1599_v41 }
  0x93   :  { %1600 = vtanh.f32 %v318_v42  ;;  %1532 = vmatmul.msk.f32.gmra.mxu0 %vm101_vm0, %v50_v40 }
  0x98   :  { %v320_v43 = vpop.f32.mrf.mxu0 }
  0x99   :  { %v1601_v45 = vpop.eup %1600  ;;  %v321_v46 = vadd.f32 %v2287_v35, %v320_v43  ;;  %v66_v43 = vld [vmem:[%s3258_s0 + $0x110] sm:$0xff] }
  0x9a   :  { %609 = vmatmul.f32.gmra.mxu1 %v1601_v45 }
  0x9b   :  { %1602 = vtanh.f32 %v321_v46  ;;  %1533 = vmatmul.msk.f32.gmra.mxu0 %vm101_vm0, %v51_v44 }
  0xa0   :  { %v323_v47 = vpop.f32.mrf.mxu0 }
  0xa1   :  { %v1603_v49 = vpop.eup %1602  ;;  %v324_v50 = vadd.f32 %v2287_v35, %v323_v47 }
  0xa2   :  { %612 = vmatmul.f32.gmra.mxu1 %v1603_v49 }
  0xa3   :  { %1604 = vtanh.f32 %v324_v50  ;;  %1534 = vmatmul.msk.f32.gmra.mxu0 %vm101_vm0, %v52_v48  ;;  %v67_v48 = vld [vmem:[%s3258_s0 + $0x118] sm:$0xff] }
  0xa8   :  { %v326_v51 = vpop.f32.mrf.mxu0 }
  0xa9   :  { %v1605_v53 = vpop.eup %1604  ;;  %v327_v54 = vadd.f32 %v2287_v35, %v326_v51 }
  0xaa   :  { %615 = vmatmul.f32.gmra.mxu1 %v1605_v53  ;;  %v68_v53 = vld [vmem:[%s3258_s0 + $0x120] sm:$0xff] }
  0xab   :  { %1606 = vtanh.f32 %v327_v54  ;;  %1535 = vmatmul.msk.f32.gmra.mxu0 %vm101_vm0, %v53_v52 }
  0xb0   :  { %v329_v55 = vpop.f32.mrf.mxu0 }
  0xb1   :  { %v1607_v57 = vpop.eup %1606  ;;  %v330_v58 = vadd.f32 %v2287_v35, %v329_v55 }
  0xb2   :  { %618 = vmatmul.f32.gmra.mxu1 %v1607_v57 }
  0xb3   :  { %1608 = vtanh.f32 %v330_v58  ;;  %1536 = vmatmul.msk.f32.gmra.mxu0 %vm101_vm0, %v54_v56  ;;  %v69_v58 = vld [vmem:[%s3258_s0 + $0x128] sm:$0xff] }
  0xb8   :  { %v332_v59 = vpop.f32.mrf.mxu0 }
  0xb9   :  { %v1609_v61 = vpop.eup %1608  ;;  %v333_v62 = vadd.f32 %v2287_v35, %v332_v59 }
  0xba   :  { %621 = vmatmul.f32.gmra.mxu1 %v1609_v61 }
  0xbb   :  { %1610 = vtanh.f32 %v333_v62  ;;  %1537 = vmatmul.msk.f32.gmra.mxu0 %vm101_vm0, %v55_v60 }
  0xc0   :  { %v335_v63 = vpop.f32.mrf.mxu0 }
  0xc1   :  { %v1611_v1 = vpop.eup %1610  ;;  %v336_v2 = vadd.f32 %v2287_v35, %v335_v63  ;;  %v70_v63 = vld [vmem:[%s3258_s0 + $0x130] sm:$0xff] }
  0xc2   :  { %624 = vmatmul.f32.gmra.mxu1 %v1611_v1 }
  0xc3   :  { %1612 = vtanh.f32 %v336_v2  ;;  %1538 = vmatmul.msk.f32.gmra.mxu0 %vm101_vm0, %v56_v0 }
  0xc8   :  { %v338_v3 = vpop.f32.mrf.mxu0 }
  0xc9   :  { %v1613_v5 = vpop.eup %1612  ;;  %v339_v6 = vadd.f32 %v2287_v35, %v338_v3 }
  0xca   :  { %627 = vmatmul.f32.gmra.mxu1 %v1613_v5 }
  0xcb   :  { %1614 = vtanh.f32 %v339_v6  ;;  %1539 = vmatmul.msk.f32.gmra.mxu0 %vm101_vm0, %v57_v4  ;;  %v71_v4 = vld [vmem:[%s3258_s0 + $0x138] sm:$0xff] }
  0xd0   :  { %v341_v7 = vpop.f32.mrf.mxu0 }
  0xd1   :  { %v1615_v9 = vpop.eup %1614  ;;  %v342_v10 = vadd.f32 %v2287_v35, %v341_v7 }
  0xd2   :  { %630 = vmatmul.f32.gmra.mxu1 %v1615_v9 }
  0xd3   :  { %1616 = vtanh.f32 %v342_v10  ;;  %1540 = vmatmul.msk.f32.gmra.mxu0 %vm101_vm0, %v58_v8  ;;  %v72_v8 = vld [vmem:[%s3258_s0 + $0x140] sm:$0xff] }
  0xd8   :  { %v344_v11 = vpop.f32.mrf.mxu0 }
  0xd9   :  { %v1617_v13 = vpop.eup %1616  ;;  %v345_v14 = vadd.f32 %v2287_v35, %v344_v11 }
  0xda   :  { %633 = vmatmul.f32.gmra.mxu1 %v1617_v13  ;;  %v73_v13 = vld [vmem:[%s3258_s0 + $0x148] sm:$0xff] }
  0xdb   :  { %1618 = vtanh.f32 %v345_v14  ;;  %1541 = vmatmul.msk.f32.gmra.mxu0 %vm101_vm0, %v59_v12 }
  0xe0   :  { %v347_v15 = vpop.f32.mrf.mxu0 }
  0xe1   :  { %v1619_v17 = vpop.eup %1618  ;;  %v348_v18 = vadd.f32 %v2287_v35, %v347_v15 }
  0xe2   :  { %636 = vmatmul.f32.gmra.mxu1 %v1619_v17 }
  0xe3   :  { %1620 = vtanh.f32 %v348_v18  ;;  %1542 = vmatmul.msk.f32.gmra.mxu0 %vm101_vm0, %v60_v16  ;;  %v74_v18 = vld [vmem:[%s3258_s0 + $0x150] sm:$0xff] }
  0xe8   :  { %v350_v19 = vpop.f32.mrf.mxu0 }
  0xe9   :  { %v1621_v21 = vpop.eup %1620  ;;  %v351_v22 = vadd.f32 %v2287_v35, %v350_v19 }
  0xea   :  { %639 = vmatmul.f32.gmra.mxu1 %v1621_v21 }
  0xeb   :  { %1622 = vtanh.f32 %v351_v22  ;;  %1543 = vmatmul.msk.f32.gmra.mxu0 %vm101_vm0, %v61_v20 }
  0xf0   :  { %v353_v23 = vpop.f32.mrf.mxu0 }
  0xf1   :  { %v1623_v25 = vpop.eup %1622  ;;  %v354_v26 = vadd.f32 %v2287_v35, %v353_v23  ;;  %v75_v23 = vld [vmem:[%s3258_s0 + $0x158] sm:$0xff] }
  0xf2   :  { %642 = vmatmul.f32.gmra.mxu1 %v1623_v25 }
  0xf3   :  { %1624 = vtanh.f32 %v354_v26  ;;  %1544 = vmatmul.msk.f32.gmra.mxu0 %vm101_vm0, %v62_v24 }
  0xf8   :  { %v356_v27 = vpop.f32.mrf.mxu0 }
  0xf9   :  { %v1625_v29 = vpop.eup %1624  ;;  %v357_v30 = vadd.f32 %v2287_v35, %v356_v27 }
  0xfa   :  { %645 = vmatmul.f32.gmra.mxu1 %v1625_v29 }
  0xfb   :  { %1626 = vtanh.f32 %v357_v30  ;;  %1545 = vmatmul.msk.f32.gmra.mxu0 %vm101_vm0, %v63_v28  ;;  %v76_v28 = vld [vmem:[%s3258_s0 + $0x160] sm:$0xff] }
 0x100   :  { %v359_v31 = vpop.f32.mrf.mxu0 }
 0x101   :  { %v1627_v34 = vpop.eup %1626  ;;  %v360_v36 = vadd.f32 %v2287_v35, %v359_v31 }
 0x102   :  { %648 = vmatmul.f32.gmra.mxu1 %v1627_v34 }
 0x103   :  { %1628 = vtanh.f32 %v360_v36  ;;  %1546 = vmatmul.msk.f32.gmra.mxu0 %vm101_vm0, %v64_v32  ;;  %v77_v32 = vld [vmem:[%s3258_s0 + $0x168] sm:$0xff] }
 0x108   :  { %v362_v37 = vpop.f32.mrf.mxu0 }
 0x109   :  { %v1629_v39 = vpop.eup %1628  ;;  %v363_v40 = vadd.f32 %v2287_v35, %v362_v37 }
 0x10a   :  { %651 = vmatmul.f32.gmra.mxu1 %v1629_v39  ;;  %v78_v39 = vld [vmem:[%s3258_s0 + $0x170] sm:$0xff] }
 0x10b   :  { %1630 = vtanh.f32 %v363_v40  ;;  %1547 = vmatmul.msk.f32.gmra.mxu0 %vm101_vm0, %v65_v38 }
 0x10f   :  { %v2374_v41 = vpop.f32.mrf.mxu1 }
 0x110   :  { %v365_v42 = vpop.f32.mrf.mxu0 }
 0x111   :  { %v1631_v44 = vpop.eup %1630  ;;  %v366_v45 = vadd.f32 %v2287_v35, %v365_v42 }
 0x112   :  { %654 = vmatmul.f32.gmra.mxu1 %v1631_v44 }
 0x113   :  { %1632 = vtanh.f32 %v366_v45  ;;  %1548 = vmatmul.msk.f32.gmra.mxu0 %vm101_vm0, %v66_v43  ;;  %v79_v45 = vld [vmem:[%s3258_s0 + $0x178] sm:$0xff] }
 0x117   :  { %v2381_v46 = vpop.f32.mrf.mxu1 }
 0x118   :  { %v368_v47 = vpop.f32.mrf.mxu0 }
 0x119   :  { %v1633_v49 = vpop.eup %1632  ;;  %v369_v50 = vadd.f32 %v2287_v35, %v368_v47 }
 0x11a   :  { %657 = vmatmul.f32.gmra.mxu1 %v1633_v49 }
 0x11b   :  { %1634 = vtanh.f32 %v369_v50  ;;  %1549 = vmatmul.msk.f32.gmra.mxu0 %vm101_vm0, %v67_v48 }
 0x11f   :  { %v2388_v51 = vpop.f32.mrf.mxu1 }
 0x120   :  { %v371_v52 = vpop.f32.mrf.mxu0 }
 0x121   :  { %v1635_v54 = vpop.eup %1634  ;;  %v372_v55 = vadd.f32 %v2287_v35, %v371_v52  ;;  %v80_v52 = vld [vmem:[%s3258_s0 + $0x180] sm:$0xff] }
 0x122   :  { %660 = vmatmul.f32.gmra.mxu1 %v1635_v54 }
 0x123   :  { %1636 = vtanh.f32 %v372_v55  ;;  %1550 = vmatmul.msk.f32.gmra.mxu0 %vm101_vm0, %v68_v53 }
 0x127   :  { %v2395_v56 = vpop.f32.mrf.mxu1 }
 0x128   :  { %v374_v57 = vpop.f32.mrf.mxu0 }
 0x129   :  { %v1637_v59 = vpop.eup %1636  ;;  %v375_v60 = vadd.f32 %v2287_v35, %v374_v57 }
 0x12a   :  { %663 = vmatmul.f32.gmra.mxu1 %v1637_v59 }
 0x12b   :  { %1638 = vtanh.f32 %v375_v60  ;;  %1551 = vmatmul.msk.f32.gmra.mxu0 %vm101_vm0, %v69_v58  ;;  %v81_v58 = vld [vmem:[%s3258_s0 + $0x188] sm:$0xff] }
 0x12f   :  { %v2402_v61 = vpop.f32.mrf.mxu1 }
 0x130   :  { %v377_v62 = vpop.f32.mrf.mxu0 }
 0x131   :  { %v1639_v0 = vpop.eup %1638  ;;  %v378_v1 = vadd.f32 %v2287_v35, %v377_v62 }
 0x132   :  { %666 = vmatmul.f32.gmra.mxu1 %v1639_v0 }
 0x133   :  { %1640 = vtanh.f32 %v378_v1  ;;  %1552 = vmatmul.msk.f32.gmra.mxu0 %vm101_vm0, %v70_v63  ;;  %v82_v63 = vld [vmem:[%s3258_s0 + $0x190] sm:$0xff] }
 0x137   :  { %v2409_v2 = vpop.f32.mrf.mxu1 }
 0x138   :  { %v380_v3 = vpop.f32.mrf.mxu0 }
 0x139   :  { %v1641_v5 = vpop.eup %1640  ;;  %v381_v6 = vadd.f32 %v2287_v35, %v380_v3 }
 0x13a   :  { %669 = vmatmul.f32.gmra.mxu1 %v1641_v5  ;;  %v83_v5 = vld [vmem:[%s3258_s0 + $0x198] sm:$0xff] }
 0x13b   :  { %1642 = vtanh.f32 %v381_v6  ;;  %1553 = vmatmul.msk.f32.gmra.mxu0 %vm101_vm0, %v71_v4 }
 0x13f   :  { %v2420_v11 = vpop.f32.mrf.mxu1 }
 0x140   :  { %v383_v7 = vpop.f32.mrf.mxu0 }
 0x141   :  { %v1643_v9 = vpop.eup %1642  ;;  %v384_v10 = vadd.f32 %v2287_v35, %v383_v7 }
 0x142   :  { %672 = vmatmul.f32.gmra.mxu1 %v1643_v9 }
 0x143   :  { %1644 = vtanh.f32 %v384_v10  ;;  %1554 = vmatmul.msk.f32.gmra.mxu0 %vm101_vm0, %v72_v8  ;;  %v84_v10 = vld [vmem:[%s3258_s0 + $0x1a0] sm:$0xff] }
 0x147   :  { %v2428_v16 = vpop.f32.mrf.mxu1 }
 0x148   :  { %v386_v12 = vpop.f32.mrf.mxu0 }
 0x149   :  { %v1645_v14 = vpop.eup %1644  ;;  %v387_v15 = vadd.f32 %v2287_v35, %v386_v12 }
 0x14a   :  { %675 = vmatmul.f32.gmra.mxu1 %v1645_v14 }
 0x14b   :  { %1646 = vtanh.f32 %v387_v15  ;;  %1555 = vmatmul.msk.f32.gmra.mxu0 %vm101_vm0, %v73_v13 }
 0x14f   :  { %v2435_v21 = vpop.f32.mrf.mxu1 }
 0x150   :  { %v389_v17 = vpop.f32.mrf.mxu0 }
 0x151   :  { %v1647_v19 = vpop.eup %1646  ;;  %v390_v20 = vadd.f32 %v2287_v35, %v389_v17  ;;  %v85_v17 = vld [vmem:[%s3258_s0 + $0x1a8] sm:$0xff] }
 0x152   :  { %678 = vmatmul.f32.gmra.mxu1 %v1647_v19 }
 0x153   :  { %1648 = vtanh.f32 %v390_v20  ;;  %1556 = vmatmul.msk.f32.gmra.mxu0 %vm101_vm0, %v74_v18 }
 0x157   :  { %v2442_v26 = vpop.f32.mrf.mxu1 }
 0x158   :  { %v392_v22 = vpop.f32.mrf.mxu0 }
 0x159   :  { %v1649_v24 = vpop.eup %1648  ;;  %v393_v25 = vadd.f32 %v2287_v35, %v392_v22 }
 0x15a   :  { %681 = vmatmul.f32.gmra.mxu1 %v1649_v24 }
 0x15b   :  { %1650 = vtanh.f32 %v393_v25  ;;  %1557 = vmatmul.msk.f32.gmra.mxu0 %vm101_vm0, %v75_v23  ;;  %v86_v23 = vld [vmem:[%s3258_s0 + $0x1b0] sm:$0xff] }
 0x15f   :  { %v2453_v37 = vpop.f32.mrf.mxu1 }
 0x160   :  { %v395_v27 = vpop.f32.mrf.mxu0 }
 0x161   :  { %v1651_v29 = vpop.eup %1650  ;;  %v396_v30 = vadd.f32 %v2287_v35, %v395_v27 }
 0x162   :  { %684 = vmatmul.f32.gmra.mxu1 %v1651_v29 }
 0x163   :  { %1652 = vtanh.f32 %v396_v30  ;;  %1558 = vmatmul.msk.f32.gmra.mxu0 %vm101_vm0, %v76_v28  ;;  %v87_v28 = vld [vmem:[%s3258_s0 + $0x1b8] sm:$0xff] }
 0x167   :  { %v2461_v43 = vpop.f32.mrf.mxu1 }
 0x168   :  { %v398_v31 = vpop.f32.mrf.mxu0 }
 0x169   :  { %v1653_v34 = vpop.eup %1652  ;;  %v399_v36 = vadd.f32 %v2287_v35, %v398_v31 }
 0x16a   :  { %687 = vmatmul.f32.gmra.mxu1 %v1653_v34  ;;  %v88_v34 = vld [vmem:[%s3258_s0 + $0x1c0] sm:$0xff] }
 0x16b   :  { %1654 = vtanh.f32 %v399_v36  ;;  %1559 = vmatmul.msk.f32.gmra.mxu0 %vm101_vm0, %v77_v32 }
 0x16f   :  { %v2468_v49 = vpop.f32.mrf.mxu1 }
 0x170   :  { %v401_v38 = vpop.f32.mrf.mxu0 }
 0x171   :  { %v1655_v40 = vpop.eup %1654  ;;  %v402_v42 = vadd.f32 %v2287_v35, %v401_v38 }
 0x172   :  { %690 = vmatmul.f32.gmra.mxu1 %v1655_v40 }
 0x173   :  { %1656 = vtanh.f32 %v402_v42  ;;  %1560 = vmatmul.msk.f32.gmra.mxu0 %vm101_vm0, %v78_v39  ;;  %v89_v42 = vld [vmem:[%s3258_s0 + $0x1c8] sm:$0xff] }
 0x177   :  { %v2475_v55 = vpop.f32.mrf.mxu1 }
 0x178   :  { %v404_v44 = vpop.f32.mrf.mxu0 }
 0x179   :  { %v1657_v47 = vpop.eup %1656  ;;  %v405_v48 = vadd.f32 %v2287_v35, %v404_v44 }
 0x17a   :  { %693 = vmatmul.f32.gmra.mxu1 %v1657_v47 }
 0x17b   :  { %1658 = vtanh.f32 %v405_v48  ;;  %1561 = vmatmul.msk.f32.gmra.mxu0 %vm101_vm0, %v79_v45 }
 0x17f   :  { %v2486_v3 = vpop.f32.mrf.mxu1 }
 0x180   :  { %v407_v50 = vpop.f32.mrf.mxu0 }
 0x181   :  { %v1659_v53 = vpop.eup %1658  ;;  %v408_v54 = vadd.f32 %v2287_v35, %v407_v50  ;;  %v90_v50 = vld [vmem:[%s3258_s0 + $0x1d0] sm:$0xff] }
 0x182   :  { %696 = vmatmul.f32.gmra.mxu1 %v1659_v53 }
 0x183   :  { %1660 = vtanh.f32 %v408_v54  ;;  %1562 = vmatmul.msk.f32.gmra.mxu0 %vm101_vm0, %v80_v52 }
 0x187   :  { %v2494_v8 = vpop.f32.mrf.mxu1 }
 0x188   :  { %v410_v57 = vpop.f32.mrf.mxu0 }
 0x189   :  { %v1661_v59 = vpop.eup %1660  ;;  %v411_v60 = vadd.f32 %v2287_v35, %v410_v57 }
 0x18a   :  { %699 = vmatmul.f32.gmra.mxu1 %v1661_v59 }
 0x18b   :  { %1662 = vtanh.f32 %v411_v60  ;;  %1563 = vmatmul.msk.f32.gmra.mxu0 %vm101_vm0, %v81_v58  ;;  %v91_v58 = vld [vmem:[%s3258_s0 + $0x1d8] sm:$0xff] }
 0x18f   :  { %v2501_v14 = vpop.f32.mrf.mxu1 }
 0x190   :  { %v413_v62 = vpop.f32.mrf.mxu0 }
 0x191   :  { %v1663_v0 = vpop.eup %1662  ;;  %v414_v1 = vadd.f32 %v2287_v35, %v413_v62 }
 0x192   :  { %702 = vmatmul.f32.gmra.mxu1 %v1663_v0 }
 0x193   :  { %1664 = vtanh.f32 %v414_v1  ;;  %1564 = vmatmul.msk.f32.gmra.mxu0 %vm101_vm0, %v82_v63  ;;  %v92_v63 = vld [vmem:[%s3258_s0 + $0x1e0] sm:$0xff] }
 0x197   :  { %v2508_v20 = vpop.f32.mrf.mxu1 }
 0x198   :  { %v416_v4 = vpop.f32.mrf.mxu0 }
 0x199   :  { %v1665_v6 = vpop.eup %1664  ;;  %v417_v7 = vadd.f32 %v2287_v35, %v416_v4 }
 0x19a   :  { %705 = vmatmul.f32.gmra.mxu1 %v1665_v6  ;;  %v93_v6 = vld [vmem:[%s3258_s0 + $0x1e8] sm:$0xff] }
 0x19b   :  { %1666 = vtanh.f32 %v417_v7  ;;  %1565 = vmatmul.msk.f32.gmra.mxu0 %vm101_vm0, %v83_v5 }
 0x19f   :  { %v2519_v31 = vpop.f32.mrf.mxu1 }
 0x1a0   :  { %v419_v9 = vpop.f32.mrf.mxu0 }
 0x1a1   :  { %v1667_v12 = vpop.eup %1666  ;;  %v420_v13 = vadd.f32 %v2287_v35, %v419_v9 }
 0x1a2   :  { %708 = vmatmul.f32.gmra.mxu1 %v1667_v12 }
 0x1a3   :  { %1668 = vtanh.f32 %v420_v13  ;;  %1566 = vmatmul.msk.f32.gmra.mxu0 %vm101_vm0, %v84_v10  ;;  %v94_v13 = vld [vmem:[%s3258_s0 + $0x1f0] sm:$0xff] }
 0x1a7   :  { %v2527_v39 = vpop.f32.mrf.mxu1 }
 0x1a8   :  { %v422_v15 = vpop.f32.mrf.mxu0 }
 0x1a9   :  { %v1669_v18 = vpop.eup %1668  ;;  %v423_v19 = vadd.f32 %v2287_v35, %v422_v15 }
 0x1aa   :  { %711 = vmatmul.f32.gmra.mxu1 %v1669_v18 }
 0x1ab   :  { %1670 = vtanh.f32 %v423_v19  ;;  %1567 = vmatmul.msk.f32.gmra.mxu0 %vm101_vm0, %v85_v17  ;;  %v312_v19 = vadd.f32 %v2287_v35, %v2278_v33 }
 0x1af   :  { %v2534_v47 = vpop.f32.mrf.mxu1 }
 0x1b0   :  { %v425_v22 = vpop.f32.mrf.mxu0 }
 0x1b1   :  { %v1671_v24 = vpop.eup %1670  ;;  %v426_v25 = vadd.f32 %v2287_v35, %v425_v22 }
 0x1b2   :  { %714 = vmatmul.f32.gmra.mxu1 %v1671_v24 }
 0x1b3   :  { %1672 = vtanh.f32 %v426_v25  ;;  %1568 = vmatmul.msk.f32.gmra.mxu0 %vm101_vm0, %v86_v23  ;;  %v95_v23 = vld [vmem:[%s3258_s0 + $0x1f8] sm:$0xff] }
 0x1b7   :  { %v2541_v54 = vpop.f32.mrf.mxu1 }
 0x1b8   :  { %v428_v27 = vpop.f32.mrf.mxu0 }
 0x1b9   :  { %v1673_v29 = vpop.eup %1672  ;;  %v429_v30 = vadd.f32 %v2287_v35, %v428_v27 }
 0x1ba   :  { %717 = vmatmul.f32.gmra.mxu1 %v1673_v29 }
 0x1bb   :  { %1674 = vtanh.f32 %v429_v30  ;;  %1569 = vmatmul.msk.f32.gmra.mxu0 %vm101_vm0, %v87_v28 }
 0x1bf   :  { %v2552_v4 = vpop.f32.mrf.mxu1 }
 0x1c0   :  { %v431_v32 = vpop.f32.mrf.mxu0 }
 0x1c1   :  { %v1675_v36 = vpop.eup %1674  ;;  %v432_v38 = vadd.f32 %v2287_v35, %v431_v32 }
 0x1c2   :  { %720 = vmatmul.f32.gmra.mxu1 %v1675_v36 }
 0x1c3   :  { %1676 = vtanh.f32 %v432_v38  ;;  %1570 = vmatmul.msk.f32.gmra.mxu0 %vm101_vm0, %v88_v34 }
 0x1c7   :  { %v2560_v10 = vpop.f32.mrf.mxu1 }
 0x1c8   :  { %v434_v40 = vpop.f32.mrf.mxu0 }
 0x1c9   :  { %v1677_v44 = vpop.eup %1676  ;;  %v435_v45 = vadd.f32 %v2287_v35, %v434_v40 }
 0x1ca   :  { %723 = vmatmul.f32.gmra.mxu1 %v1677_v44 }
 0x1cb   :  { %1678 = vtanh.f32 %v435_v45  ;;  %1571 = vmatmul.msk.f32.gmra.mxu0 %vm101_vm0, %v89_v42 }
 0x1cf   :  { %v2567_v18 = vpop.f32.mrf.mxu1 }
 0x1d0   :  { %v437_v48 = vpop.f32.mrf.mxu0 }
 0x1d1   :  { %v1679_v52 = vpop.eup %1678  ;;  %v438_v53 = vadd.f32 %v2287_v35, %v437_v48 }
 0x1d2   :  { %726 = vmatmul.f32.gmra.mxu1 %v1679_v52 }
 0x1d3   :  { %1680 = vtanh.f32 %v438_v53  ;;  %1572 = vmatmul.msk.f32.gmra.mxu0 %vm101_vm0, %v90_v50 }
 0x1d7   :  { %v2576_v27 = vpop.f32.mrf.mxu1 }
 0x1d8   :  { %v440_v57 = vpop.f32.mrf.mxu0 }
 0x1d9   :  { %v1681_v59 = vpop.eup %1680  ;;  %v441_v60 = vadd.f32 %v2287_v35, %v440_v57 }
 0x1da   :  { %729 = vmatmul.f32.gmra.mxu1 %v1681_v59 }
 0x1db   :  { %1682 = vtanh.f32 %v441_v60  ;;  %1573 = vmatmul.msk.f32.gmra.mxu0 %vm101_vm0, %v91_v58 }
 0x1df   :  { %v2580_v38 = vpop.f32.mrf.mxu1 }
 0x1e0   :  { %v443_v62 = vpop.f32.mrf.mxu0 }
 0x1e1   :  { %v1683_v0 = vpop.eup %1682  ;;  %v444_v1 = vadd.f32 %v2287_v35, %v443_v62 }
 0x1e2   :  { %732 = vmatmul.f32.gmra.mxu1 %v1683_v0 }
 0x1e3   :  { %1684 = vtanh.f32 %v444_v1  ;;  %1574 = vmatmul.msk.f32.gmra.mxu0 %vm101_vm0, %v92_v63 }
 0x1e7   :  { %v2583_v45 = vpop.f32.mrf.mxu1 }
 0x1e8   :  { %v446_v5 = vpop.f32.mrf.mxu0 }
 0x1e9   :  { %v1685_v7 = vpop.eup %1684  ;;  %v447_v9 = vadd.f32 %v2287_v35, %v446_v5 }
 0x1ea   :  { %735 = vmatmul.f32.gmra.mxu1 %v1685_v7 }
 0x1eb   :  { %1686 = vtanh.f32 %v447_v9  ;;  %1575 = vmatmul.msk.f32.gmra.mxu0 %vm101_vm0, %v93_v6 }
 0x1ef   :  { %v2586_v53 = vpop.f32.mrf.mxu1 }
 0x1f0   :  { %v449_v12 = vpop.f32.mrf.mxu0 }
 0x1f1   :  { %v1687_v15 = vpop.eup %1686  ;;  %v450_v17 = vadd.f32 %v2287_v35, %v449_v12 }
 0x1f2   :  { %738 = vmatmul.f32.gmra.mxu1 %v1687_v15 }
 0x1f3   :  { %1688 = vtanh.f32 %v450_v17  ;;  %1576 = vmatmul.msk.f32.gmra.mxu0 %vm101_vm0, %v94_v13 }
 0x1f7   :  { %v2589_v60 = vpop.f32.mrf.mxu1 }
 0x1f8   :  { %v452_v22 = vpop.f32.mrf.mxu0 }
 0x1f9   :  { %v1689_v24 = vpop.eup %1688  ;;  %v453_v25 = vadd.f32 %v2287_v35, %v452_v22 }
 0x1fa   :  { %741 = vmatmul.f32.gmra.mxu1 %v1689_v24 }
 0x1fb   :  { %1690 = vtanh.f32 %v453_v25  ;;  %1577 = vmatmul.msk.f32.gmra.mxu0 %vm101_vm0, %v95_v23 }
 0x1fc   :  { %1692 = vtanh.f32 %v312_v19 }
 0x1ff   :  { %v2593_v7 = vpop.f32.mrf.mxu1 }
 0x200   :  { %v455_v28 = vpop.f32.mrf.mxu0 }
 0x201   :  { %v1691_v29 = vpop.eup %1690  ;;  %v456_v30 = vadd.f32 %v2287_v35, %v455_v28 }
 0x202   :  { %v1693_v33 = vpop.eup %1692  ;;  %744 = vmatmul.f32.gmra.mxu1 %v1691_v29  ;;  %v875_v29 = vld [vmem:[%s3262_s5 + $0x78] sm:$0xff] }
 0x203   :  { %1694 = vtanh.f32 %v456_v30  ;;  %603 = vmatmul.f32.vlgmr.msrb.gmra.mxu0 %v1693_v33  ;;  %880 = vmatpush.msra.mxu2 %v875_v29  ;;  %v874_v30 = vld [vmem:[%s3262_s5 + $0x70] sm:$0xff]  ;;  %v873_v33 = vld [vmem:[%s3262_s5 + $0x68] sm:$0xff] }
 0x205   :  { %881 = vmatpush.msra.mxu2 %v874_v30 }
 0x207   :  { %v2596_v15 = vpop.f32.mrf.mxu1  ;;  %882 = vmatpush.msra.mxu2 %v873_v33 }
 0x208   :  { %v458_v32 = vpop.f32.mrf.mxu0 }
 0x209   :  { %v1695_v34 = vpop.eup %1694  ;;  %v459_v36 = vadd.f32 %v2287_v35, %v458_v32 }
 0x20a   :  { %747 = vmatmul.f32.gmra.mxu1 %v1695_v34 }
 0x20b   :  { %1696 = vtanh.f32 %v459_v36  ;;  %v872_v36 = vld [vmem:[%s3262_s5 + $0x60] sm:$0xff] }
 0x20c   :  { %883 = vmatpush.msra.mxu2 %v872_v36 }
 0x20f   :  { %v2599_v23 = vpop.f32.mrf.mxu1 }
 0x210   :  { %v461_v40 = vpop.f32.mrf.mxu0 }
 0x211   :  { %v1697_v42 = vpop.eup %1696  ;;  %v462_v44 = vadd.f32 %v2287_v35, %v461_v40 }
 0x212   :  { %750 = vmatmul.f32.gmra.mxu1 %v1697_v42 }
 0x213   :  { %1698 = vtanh.f32 %v462_v44  ;;  %v871_v44 = vld [vmem:[%s3262_s5 + $0x58] sm:$0xff] }
 0x214   :  { %884 = vmatpush.msra.mxu2 %v871_v44 }
 0x217   :  { %v2611_v32 = vpop.f32.mrf.mxu1 }
 0x218   :  { %v464_v48 = vpop.f32.mrf.mxu0 }
 0x219   :  { %v1699_v50 = vpop.eup %1698  ;;  %v465_v52 = vadd.f32 %v2287_v35, %v464_v48  ;;  %v870_v48 = vld [vmem:[%s3262_s5 + $0x50] sm:$0xff] }
 0x21a   :  { %753 = vmatmul.f32.gmra.mxu1 %v1699_v50  ;;  %885 = vmatpush.msra.mxu2 %v870_v48  ;;  %v869_v50 = vld [vmem:[%s3262_s5 + $0x48] sm:$0xff] }
 0x21b   :  { %1700 = vtanh.f32 %v465_v52 }
 0x21c   :  { %886 = vmatpush.msra.mxu2 %v869_v50  ;;  %v2669_v50 = vld [vmem:[%s3261_s4] ss:$0 sm:$0xff] }
 0x220   :  { %v467_v57 = vpop.f32.mrf.mxu0 }
 0x221   :  { %v1701_v58 = vpop.eup %1700  ;;  %v468_v59 = vadd.f32 %v2287_v35, %v467_v57  ;;  %v868_v57 = vld [vmem:[%s3262_s5 + $0x40] sm:$0xff] }
 0x222   :  { %756 = vmatmul.f32.gmra.mxu1 %v1701_v58  ;;  %887 = vmatpush.msra.mxu2 %v868_v57 }
 0x223   :  { %1702 = vtanh.f32 %v468_v59 }
 0x228   :  { %v470_v62 = vpop.f32.mrf.mxu0 }
 0x229   :  { %v1703_v63 = vpop.eup %1702  ;;  %v471_v0 = vadd.f32 %v2287_v35, %v470_v62  ;;  %v2630_v62 = vpop.f32.mrf.mxu1 }
 0x22a   :  { %759 = vmatmul.f32.gmra.mxu1 %v1703_v63  ;;  %v867_v63 = vld [vmem:[%s3262_s5 + $0x38] sm:$0xff] }
 0x22b   :  { %1704 = vtanh.f32 %v471_v0  ;;  %888 = vmatpush.msra.mxu2 %v867_v63  ;;  %v866_v0 = vld [vmem:[%s3262_s5 + $0x30] sm:$0xff]  ;;  %v608_v63 = vadd.f32 %v2669_v50, %v2374_v41  ;;  %v620_v41 = vadd.f32 %v2669_v50, %v2402_v61  ;;  %v632_v61 = vadd.f32 %v2669_v50, %v2435_v21 }
 0x22c   :  { %v1167_v21 = vld [vmem:[%s3264_s7 + $0x70] sm:$0xff] }
 0x22d   :  { %889 = vmatpush.msra.mxu2 %v866_v0 }
 0x230   :  { %v473_v1 = vpop.f32.mrf.mxu0 }
 0x231   :  { %v1705_v5 = vpop.eup %1704  ;;  %v474_v6 = vadd.f32 %v2287_v35, %v473_v1  ;;  %v865_v1 = vld [vmem:[%s3262_s5 + $0x28] sm:$0xff] }
 0x232   :  { %762 = vmatmul.f32.gmra.mxu1 %v1705_v5  ;;  %890 = vmatpush.msra.mxu2 %v865_v1 }
 0x233   :  { %1706 = vtanh.f32 %v474_v6  ;;  %v864_v6 = vld [vmem:[%s3262_s5 + $0x20] sm:$0xff] }
 0x234   :  { %891 = vmatpush.msra.mxu2 %v864_v6 }
 0x238   :  { %v476_v9 = vpop.f32.mrf.mxu0 }
 0x239   :  { %v1707_v12 = vpop.eup %1706  ;;  %v477_v13 = vadd.f32 %v2287_v35, %v476_v9 }
 0x23a   :  { %765 = vmatmul.f32.gmra.mxu1 %v1707_v12 }
 0x23b   :  { %1708 = vtanh.f32 %v477_v13  ;;  %v863_v13 = vld [vmem:[%s3262_s5 + $0x18] sm:$0xff] }
 0x23c   :  { %892 = vmatpush.msra.mxu2 %v863_v13 }
 0x240   :  { %v479_v17 = vpop.f32.mrf.mxu0 }
 0x241   :  { %v1709_v19 = vpop.eup %1708  ;;  %v480_v22 = vadd.f32 %v2287_v35, %v479_v17  ;;  %v862_v17 = vld [vmem:[%s3262_s5 + $0x10] sm:$0xff] }
 0x242   :  { %768 = vmatmul.f32.gmra.mxu1 %v1709_v19  ;;  %v2651_v19 = vpop.f32.mrf.mxu1  ;;  %893 = vmatpush.msra.mxu2 %v862_v17 }
 0x243   :  { %1710 = vtanh.f32 %v480_v22  ;;  %v861_v22 = vld [vmem:[%s3262_s5 + $0x8] sm:$0xff] }
 0x244   :  { %894 = vmatpush.msra.mxu2 %v861_v22 }
 0x248   :  { %v482_v24 = vpop.f32.mrf.mxu0 }
 0x249   :  { %v1711_v25 = vpop.eup %1710  ;;  %v483_v28 = vadd.f32 %v2287_v35, %v482_v24 }
 0x24a   :  { %771 = vmatmul.f32.gmra.mxu1 %v1711_v25  ;;  %v860_v25 = vld [vmem:[%s3262_s5] sm:$0xff]  ;;  %v2660_v30 = vpop.f32.mrf.mxu1 }
 0x24b   :  { %1712 = vtanh.f32 %v483_v28  ;;  %895 = vmatpush.msra.mxu2 %v860_v25 }
 0x250   :  { %v485_v34 = vpop.f32.mrf.mxu0 }
 0x251   :  { %v1713_v40 = vpop.eup %1712  ;;  %v486_v42 = vadd.f32 %v2287_v35, %v485_v34 }
 0x252   :  { %774 = vmatmul.f32.gmra.mxu1 %v1713_v40  ;;  %v2663_v40 = vpop.f32.mrf.mxu1 }
 0x253   :  { %1714 = vtanh.f32 %v486_v42 }
 0x258   :  { %v488_v52 = vpop.f32.mrf.mxu0 }
 0x259   :  { %v1715_v58 = vpop.eup %1714  ;;  %v489_v59 = vadd.f32 %v2287_v35, %v488_v52 }
 0x25a   :  { %777 = vmatmul.f32.gmra.mxu1 %v1715_v58 }
 0x25b   :  { %1716 = vtanh.f32 %v489_v59  ;;  %v2672_v59 = vpop.f32.mrf.mxu1 }
 0x260   :  { %v491_v5 = vpop.f32.mrf.mxu0 }
 0x261   :  { %v1717_v9 = vpop.eup %1716  ;;  %v492_v12 = vadd.f32 %v2287_v35, %v491_v5  ;;  %v614_v5 = vadd.f32 %v2669_v50, %v2388_v51  ;;  %v626_v51 = vadd.f32 %v2669_v50, %v2420_v11  ;;  %v638_v11 = vadd.f32 %v2669_v50, %v2453_v37  ;;  %v1165_v37 = vld [vmem:[%s3264_s7 + $0x60] sm:$0xff] }
 0x262   :  { %780 = vmatmul.f32.gmra.mxu1 %v1717_v9  ;;  %v617_v9 = vadd.f32 %v2669_v50, %v2395_v56  ;;  %v629_v56 = vadd.f32 %v2669_v50, %v2428_v16  ;;  %v1168_v16 = vld [vmem:[%s3264_s7 + $0x78] sm:$0xff] }
 0x263   :  { %1718 = vtanh.f32 %v492_v12  ;;  %1173 = vmatpush.msra.mxu3 %v1168_v16  ;;  %v665_v16 = vadd.f32 %v2669_v50, %v2527_v39 }
 0x265   :  { %1174 = vmatpush.msra.mxu3 %v1167_v21 }
 0x268   :  { %v494_v24 = vpop.f32.mrf.mxu0 }
 0x269   :  { %v1719_v28 = vpop.eup %1718  ;;  %v495_v29 = vadd.f32 %v2287_v35, %v494_v24 }
 0x26a   :  { %783 = vmatmul.f32.gmra.mxu1 %v1719_v28 }
 0x26b   :  { %1720 = vtanh.f32 %v495_v29 }
 0x270   :  { %v497_v33 = vpop.f32.mrf.mxu0 }
 0x271   :  { %v1721_v34 = vpop.eup %1720  ;;  %v498_v36 = vadd.f32 %v2287_v35, %v497_v33  ;;  %v641_v33 = vadd.f32 %v2669_v50, %v2461_v43  ;;  %v1161_v43 = vld [vmem:[%s3264_s7 + $0x40] sm:$0xff] }
 0x272   :  { %786 = vmatmul.f32.gmra.mxu1 %v1721_v34  ;;  %v1164_v34 = vld [vmem:[%s3264_s7 + $0x58] sm:$0xff] }
 0x273   :  { %1722 = vtanh.f32 %v498_v36 }
 0x278   :  { %v500_v42 = vpop.f32.mrf.mxu0 }
 0x279   :  { %v1723_v44 = vpop.eup %1722  ;;  %v501_v48 = vadd.f32 %v2287_v35, %v500_v42  ;;  %v611_v35 = vadd.f32 %v2669_v50, %v2381_v46  ;;  %v623_v46 = vadd.f32 %v2669_v50, %v2409_v2  ;;  %v635_v2 = vadd.f32 %v2669_v50, %v2442_v26  ;;  %v1166_v26 = vld [vmem:[%s3264_s7 + $0x68] sm:$0xff]  ;;  %v1163_v42 = vld [vmem:[%s3264_s7 + $0x50] sm:$0xff] }
 0x27a   :  { %789 = vmatmul.f32.gmra.mxu1 %v1723_v44  ;;  %1175 = vmatpush.msra.mxu3 %v1166_v26  ;;  %v1162_v44 = vld [vmem:[%s3264_s7 + $0x48] sm:$0xff] }
 0x27b   :  { %1724 = vtanh.f32 %v501_v48  ;;  %v1160_v48 = vld [vmem:[%s3264_s7 + $0x38] sm:$0xff] }
 0x27c   :  { %1176 = vmatpush.msra.mxu3 %v1165_v37  ;;  %v668_v37 = vadd.f32 %v2669_v50, %v2534_v47 }
 0x27e   :  { %1177 = vmatpush.msra.mxu3 %v1164_v34 }
 0x280   :  { %v604_v52 = vpop.f32.mrf.mxu0  ;;  %1178 = vmatpush.msra.mxu3 %v1163_v42  ;;  %v671_v42 = vadd.f32 %v2669_v50, %v2541_v54 }
 0x281   :  { %v1725_v57 = vpop.eup %1724  ;;  %v605_v58 = vadd.f32 %v2669_v50, %v604_v52  ;;  %v644_v52 = vadd.f32 %v2669_v50, %v2468_v49  ;;  %v647_v49 = vadd.f32 %v2669_v50, %v2475_v55  ;;  %v1153_v55 = vld [vmem:[%s3264_s7] sm:$0xff] }
 0x282   :  { %792 = vmatmul.f32.gmra.mxu1 %v1725_v57  ;;  %1179 = vmatpush.msra.mxu3 %v1162_v44 }
 0x283   :  { %1726 = vtanh.f32 %v605_v58  ;;  %v1159_v58 = vld [vmem:[%s3264_s7 + $0x30] sm:$0xff] }
 0x284   :  { %1728 = vtanh.f32 %v608_v63  ;;  %1180 = vmatpush.msra.mxu3 %v1161_v43  ;;  %v1158_v63 = vld [vmem:[%s3264_s7 + $0x28] sm:$0xff] }
 0x285   :  { %1730 = vtanh.f32 %v611_v35  ;;  %v1156_v35 = vld [vmem:[%s3264_s7 + $0x18] sm:$0xff] }
 0x286   :  { %1732 = vtanh.f32 %v614_v5  ;;  %1181 = vmatpush.msra.mxu3 %v1160_v48  ;;  %v1155_v5 = vld [vmem:[%s3264_s7 + $0x10] sm:$0xff] }
 0x287   :  { %1734 = vtanh.f32 %v617_v9  ;;  %v650_v9 = vadd.f32 %v2669_v50, %v2486_v3 }
 0x288   :  { %1736 = vtanh.f32 %v620_v41  ;;  %1182 = vmatpush.msra.mxu3 %v1159_v58  ;;  %v653_v41 = vadd.f32 %v2669_v50, %v2494_v8  ;;  %v659_v8 = vadd.f32 %v2669_v50, %v2508_v20 }
 0x289   :  { %v1727_v0 = vpop.eup %1726  ;;  %1738 = vtanh.f32 %v623_v46  ;;  %v656_v46 = vadd.f32 %v2669_v50, %v2501_v14 }
 0x28a   :  { %896 = vmatmul.f32.vlgmr.msra.gmra.mxu2 %v1727_v0  ;;  %v1729_v1 = vpop.eup %1728  ;;  %1740 = vtanh.f32 %v626_v51  ;;  %1183 = vmatpush.msra.mxu3 %v1158_v63  ;;  %v1157_v0 = vld [vmem:[%s3264_s7 + $0x20] sm:$0xff] }
 0x28b   :  { %v1731_v6 = vpop.eup %1730  ;;  %1742 = vtanh.f32 %v629_v56  ;;  %v2759_v51 = vld [vmem:[%s3263_s6] ss:$0 sm:$0xff] }
 0x28c   :  { %v1733_v12 = vpop.eup %1732  ;;  %1744 = vtanh.f32 %v632_v61  ;;  %1184 = vmatpush.msra.mxu3 %v1157_v0  ;;  %v677_v0 = vadd.f32 %v2669_v50, %v2560_v10 }
 0x28d   :  { %v1735_v13 = vpop.eup %1734  ;;  %1746 = vtanh.f32 %v635_v2 }
 0x28e   :  { %v1737_v17 = vpop.eup %1736  ;;  %1748 = vtanh.f32 %v638_v11  ;;  %1185 = vmatpush.msra.mxu3 %v1156_v35 }
 0x28f   :  { %v1739_v22 = vpop.eup %1738  ;;  %1750 = vtanh.f32 %v641_v33 }
 0x290   :  { %v1741_v24 = vpop.eup %1740  ;;  %1752 = vtanh.f32 %v644_v52  ;;  %1186 = vmatpush.msra.mxu3 %v1155_v5  ;;  %v674_v52 = vadd.f32 %v2669_v50, %v2552_v4  ;;  %v680_v5 = vadd.f32 %v2669_v50, %v2567_v18 }
 0x291   :  { %v1743_v25 = vpop.eup %1742  ;;  %1754 = vtanh.f32 %v647_v49 }
 0x292   :  { %899 = vmatmul.f32.gmra.mxu2 %v1729_v1  ;;  %v1745_v28 = vpop.eup %1744  ;;  %1756 = vtanh.f32 %v650_v9 }
 0x293   :  { %v1747_v29 = vpop.eup %1746  ;;  %1758 = vtanh.f32 %v653_v41 }
 0x294   :  { %v1749_v36 = vpop.eup %1748  ;;  %1760 = vtanh.f32 %v656_v46 }
 0x295   :  { %v1751_v57 = vpop.eup %1750 }
 0x296   :  { %v1753_v1 = vpop.eup %1752 }
 0x29a   :  { %902 = vmatmul.f32.gmra.mxu2 %v1731_v6  ;;  %v1154_v6 = vld [vmem:[%s3264_s7 + $0x8] sm:$0xff] }
 0x29b   :  { %1187 = vmatpush.msra.mxu3 %v1154_v6 }
 0x29d   :  { %1188 = vmatpush.msra.mxu3 %v1153_v55 }
 0x2a2   :  { %905 = vmatmul.f32.gmra.mxu2 %v1733_v12  ;;  %v1755_v12 = vpop.eup %1754 }
 0x2aa   :  { %908 = vmatmul.f32.gmra.mxu2 %v1735_v13  ;;  %v1757_v13 = vpop.eup %1756 }
 0x2b2   :  { %911 = vmatmul.f32.gmra.mxu2 %v1737_v17  ;;  %v1759_v17 = vpop.eup %1758 }
 0x2b3   :  { %v1761_v56 = vpop.eup %1760 }
 0x2ba   :  { %914 = vmatmul.f32.gmra.mxu2 %v1739_v22 }
 0x2c2   :  { %917 = vmatmul.f32.gmra.mxu2 %v1741_v24 }
 0x2ca   :  { %920 = vmatmul.f32.gmra.mxu2 %v1743_v25  ;;  %v662_v25 = vadd.f32 %v2669_v50, %v2519_v31 }
 0x2d2   :  { %923 = vmatmul.f32.gmra.mxu2 %v1745_v28 }
 0x2da   :  { %926 = vmatmul.f32.gmra.mxu2 %v1747_v29 }
 0x2e2   :  { %929 = vmatmul.f32.gmra.mxu2 %v1749_v36 }
 0x2ea   :  { %932 = vmatmul.f32.gmra.mxu2 %v1751_v57 }
 0x2f2   :  { %935 = vmatmul.f32.gmra.mxu2 %v1753_v1 }
 0x2fa   :  { %938 = vmatmul.f32.gmra.mxu2 %v1755_v12  ;;  %v683_v12 = vadd.f32 %v2669_v50, %v2576_v27 }
 0x302   :  { %941 = vmatmul.f32.gmra.mxu2 %v1757_v13 }
 0x30a   :  { %944 = vmatmul.f32.gmra.mxu2 %v1759_v17  ;;  %v686_v17 = vadd.f32 %v2669_v50, %v2580_v38 }
 0x30d   :  { %v897_v3 = vpop.f32.mrf.mxu2 }
 0x30e   :  { %v898_v22 = vadd.f32 %v2759_v51, %v897_v3 }
 0x310   :  { %1762 = vtanh.f32 %v898_v22 }
 0x311   :  { %1764 = vtanh.f32 %v659_v8 }
 0x312   :  { %947 = vmatmul.f32.gmra.mxu2 %v1761_v56  ;;  %v689_v56 = vadd.f32 %v2669_v50, %v2583_v45 }
 0x315   :  { %v900_v24 = vpop.f32.mrf.mxu2 }
 0x316   :  { %v1763_v14 = vpop.eup %1762  ;;  %v901_v61 = vadd.f32 %v2759_v51, %v900_v24 }
 0x317   :  { %1189 = vmatmul.f32.vlgmr.msra.gmra.mxu3 %v1763_v14  ;;  %v1765_v2 = vpop.eup %1764 }
 0x318   :  { %1766 = vtanh.f32 %v901_v61 }
 0x319   :  { %1768 = vtanh.f32 %v662_v25  ;;  %v692_v25 = vadd.f32 %v2669_v50, %v2586_v53 }
 0x31a   :  { %950 = vmatmul.f32.gmra.mxu2 %v1765_v2 }
 0x31d   :  { %v903_v28 = vpop.f32.mrf.mxu2 }
 0x31e   :  { %v1767_v11 = vpop.eup %1766  ;;  %v904_v20 = vadd.f32 %v2759_v51, %v903_v28 }
 0x31f   :  { %1192 = vmatmul.f32.gmra.mxu3 %v1767_v11  ;;  %v1769_v29 = vpop.eup %1768 }
 0x320   :  { %1770 = vtanh.f32 %v904_v20  ;;  %v695_v20 = vadd.f32 %v2669_v50, %v2589_v60 }
 0x321   :  { %1772 = vtanh.f32 %v665_v16 }
 0x322   :  { %953 = vmatmul.f32.gmra.mxu2 %v1769_v29 }
 0x325   :  { %v906_v21 = vpop.f32.mrf.mxu2 }
 0x326   :  { %v1771_v26 = vpop.eup %1770  ;;  %v907_v31 = vadd.f32 %v2759_v51, %v906_v21 }
 0x327   :  { %1195 = vmatmul.f32.gmra.mxu3 %v1771_v26  ;;  %v1773_v33 = vpop.eup %1772  ;;  %v698_v26 = vadd.f32 %v2669_v50, %v2593_v7 }
 0x328   :  { %1774 = vtanh.f32 %v907_v31 }
 0x329   :  { %1776 = vtanh.f32 %v668_v37 }
 0x32a   :  { %956 = vmatmul.f32.gmra.mxu2 %v1773_v33 }
 0x32d   :  { %v909_v34 = vpop.f32.mrf.mxu2 }
 0x32e   :  { %v1775_v36 = vpop.eup %1774  ;;  %v910_v39 = vadd.f32 %v2759_v51, %v909_v34  ;;  %v701_v34 = vadd.f32 %v2669_v50, %v2596_v15  ;;  %v2809_v15 = vpop.f32.mrf.mxu1 }
 0x32f   :  { %1198 = vmatmul.f32.gmra.mxu3 %v1775_v36  ;;  %v1777_v44 = vpop.eup %1776 }
 0x330   :  { %1778 = vtanh.f32 %v910_v39 }
 0x331   :  { %1780 = vtanh.f32 %v671_v42 }
 0x332   :  { %959 = vmatmul.f32.gmra.mxu2 %v1777_v44  ;;  %v704_v44 = vadd.f32 %v2669_v50, %v2599_v23 }
 0x335   :  { %v912_v43 = vpop.f32.mrf.mxu2 }
 0x336   :  { %v1779_v48 = vpop.eup %1778  ;;  %v913_v47 = vadd.f32 %v2759_v51, %v912_v43 }
 0x337   :  { %1201 = vmatmul.f32.gmra.mxu3 %v1779_v48  ;;  %v1781_v57 = vpop.eup %1780 }
 0x338   :  { %1782 = vtanh.f32 %v913_v47 }
 0x339   :  { %1784 = vtanh.f32 %v674_v52 }
 0x33a   :  { %962 = vmatmul.f32.gmra.mxu2 %v1781_v57  ;;  %v707_v57 = vadd.f32 %v2669_v50, %v2611_v32 }
 0x33d   :  { %v915_v58 = vpop.f32.mrf.mxu2 }
 0x33e   :  { %v1783_v63 = vpop.eup %1782  ;;  %v916_v54 = vadd.f32 %v2759_v51, %v915_v58 }
 0x33f   :  { %1204 = vmatmul.f32.gmra.mxu3 %v1783_v63  ;;  %v1785_v49 = vpop.eup %1784 }
 0x340   :  { %1786 = vtanh.f32 %v916_v54 }
 0x341   :  { %1788 = vtanh.f32 %v677_v0  ;;  %v710_v0 = vadd.f32 %v2669_v50, %v2630_v62 }
 0x342   :  { %965 = vmatmul.f32.gmra.mxu2 %v1785_v49  ;;  %v2820_v49 = vld [vmem:[%s3265_s8] ss:$0 sm:$0xff] }
 0x345   :  { %v918_v35 = vpop.f32.mrf.mxu2 }
 0x346   :  { %v1787_v1 = vpop.eup %1786  ;;  %v919_v4 = vadd.f32 %v2759_v51, %v918_v35  ;;  %v2822_v35 = vpop.f32.mrf.mxu1 }
 0x347   :  { %1207 = vmatmul.f32.gmra.mxu3 %v1787_v1  ;;  %v1789_v6 = vpop.eup %1788 }
 0x348   :  { %1790 = vtanh.f32 %v919_v4 }
 0x349   :  { %1792 = vtanh.f32 %v680_v5 }
 0x34a   :  { %968 = vmatmul.f32.gmra.mxu2 %v1789_v6 }
 0x34d   :  { %v921_v55 = vpop.f32.mrf.mxu2 }
 0x34e   :  { %v1791_v9 = vpop.eup %1790  ;;  %v922_v10 = vadd.f32 %v2759_v51, %v921_v55  ;;  %v713_v55 = vadd.f32 %v2669_v50, %v2651_v19 }
 0x34f   :  { %1210 = vmatmul.f32.gmra.mxu3 %v1791_v9  ;;  %v1793_v41 = vpop.eup %1792 }
 0x350   :  { %1794 = vtanh.f32 %v922_v10  ;;  %v2828_v10 = vpop.f32.mrf.mxu1 }
 0x351   :  { %1796 = vtanh.f32 %v683_v12 }
 0x352   :  { %971 = vmatmul.f32.gmra.mxu2 %v1793_v41 }
 0x355   :  { %v924_v13 = vpop.f32.mrf.mxu2 }
 0x356   :  { %v1795_v46 = vpop.eup %1794  ;;  %v925_v18 = vadd.f32 %v2759_v51, %v924_v13 }
 0x357   :  { %1213 = vmatmul.f32.gmra.mxu3 %v1795_v46  ;;  %v1797_v3 = vpop.eup %1796 }
 0x358   :  { %1798 = vtanh.f32 %v925_v18 }
 0x359   :  { %1800 = vtanh.f32 %v686_v17  ;;  %v716_v17 = vadd.f32 %v2669_v50, %v2660_v30 }
 0x35a   :  { %974 = vmatmul.f32.gmra.mxu2 %v1797_v3 }
 0x35d   :  { %v927_v22 = vpop.f32.mrf.mxu2 }
 0x35e   :  { %v1799_v8 = vpop.eup %1798  ;;  %v928_v27 = vadd.f32 %v2759_v51, %v927_v22 }
 0x35f   :  { %1216 = vmatmul.f32.gmra.mxu3 %v1799_v8  ;;  %v1801_v24 = vpop.eup %1800 }
 0x360   :  { %1802 = vtanh.f32 %v928_v27 }
 0x361   :  { %1804 = vtanh.f32 %v689_v56  ;;  %v2839_v56 = vpop.f32.mrf.mxu1 }
 0x362   :  { %977 = vmatmul.f32.gmra.mxu2 %v1801_v24 }
 0x365   :  { %v930_v14 = vpop.f32.mrf.mxu2 }
 0x366   :  { %v1803_v61 = vpop.eup %1802  ;;  %v931_v38 = vadd.f32 %v2759_v51, %v930_v14 }
 0x367   :  { %1219 = vmatmul.f32.gmra.mxu3 %v1803_v61  ;;  %v1805_v2 = vpop.eup %1804  ;;  %v719_v61 = vadd.f32 %v2669_v50, %v2663_v40 }
 0x368   :  { %1806 = vtanh.f32 %v931_v38 }
 0x369   :  { %1808 = vtanh.f32 %v692_v25 }
 0x36a   :  { %980 = vmatmul.f32.gmra.mxu2 %v1805_v2 }
 0x36d   :  { %v933_v28 = vpop.f32.mrf.mxu2 }
 0x36e   :  { %v1807_v11 = vpop.eup %1806  ;;  %v934_v45 = vadd.f32 %v2759_v51, %v933_v28 }
 0x36f   :  { %1222 = vmatmul.f32.gmra.mxu3 %v1807_v11  ;;  %v1809_v16 = vpop.eup %1808 }
 0x370   :  { %1810 = vtanh.f32 %v934_v45 }
 0x371   :  { %1812 = vtanh.f32 %v695_v20  ;;  %v2853_v20 = vpop.f32.mrf.mxu1 }
 0x372   :  { %983 = vmatmul.f32.gmra.mxu2 %v1809_v16  ;;  %v722_v16 = vadd.f32 %v2669_v50, %v2672_v59  ;;  %v725_v59 = vadd.f32 %v2669_v50, %v2809_v15 }
 0x375   :  { %v936_v29 = vpop.f32.mrf.mxu2 }
 0x376   :  { %v1811_v21 = vpop.eup %1810  ;;  %v937_v53 = vadd.f32 %v2759_v51, %v936_v29 }
 0x377   :  { %1225 = vmatmul.f32.gmra.mxu3 %v1811_v21  ;;  %v1813_v31 = vpop.eup %1812 }
 0x378   :  { %1814 = vtanh.f32 %v937_v53 }
 0x379   :  { %1816 = vtanh.f32 %v698_v26 }
 0x37a   :  { %986 = vmatmul.f32.gmra.mxu2 %v1813_v31 }
 0x37d   :  { %v939_v37 = vpop.f32.mrf.mxu2 }
 0x37e   :  { %v1815_v33 = vpop.eup %1814  ;;  %v940_v60 = vadd.f32 %v2759_v51, %v939_v37 }
 0x37f   :  { %1228 = vmatmul.f32.gmra.mxu3 %v1815_v33  ;;  %v1817_v36 = vpop.eup %1816 }
 0x380   :  { %1818 = vtanh.f32 %v940_v60  ;;  %v2866_v60 = vpop.f32.mrf.mxu1 }
 0x381   :  { %1820 = vtanh.f32 %v701_v34 }
 0x382   :  { %989 = vmatmul.f32.gmra.mxu2 %v1817_v36 }
 0x385   :  { %v942_v39 = vpop.f32.mrf.mxu2 }
 0x386   :  { %v1819_v42 = vpop.eup %1818  ;;  %v943_v7 = vadd.f32 %v2759_v51, %v942_v39 }
 0x387   :  { %1231 = vmatmul.f32.gmra.mxu3 %v1819_v42  ;;  %v1821_v43 = vpop.eup %1820 }
 0x388   :  { %1822 = vtanh.f32 %v943_v7  ;;  %v2876_v15 = vpop.f32.mrf.mxu1 }
 0x389   :  { %1824 = vtanh.f32 %v704_v44 }
 0x38a   :  { %992 = vmatmul.f32.gmra.mxu2 %v1821_v43 }
 0x38d   :  { %v945_v48 = vpop.f32.mrf.mxu2 }
 0x38e   :  { %v1823_v47 = vpop.eup %1822  ;;  %v946_v52 = vadd.f32 %v2759_v51, %v945_v48  ;;  %v728_v48 = vadd.f32 %v2669_v50, %v2822_v35 }
 0x38f   :  { %1234 = vmatmul.f32.gmra.mxu3 %v1823_v47  ;;  %v1825_v58 = vpop.eup %1824 }
 0x390   :  { %1826 = vtanh.f32 %v946_v52 }
 0x391   :  { %1828 = vtanh.f32 %v707_v57 }
 0x392   :  { %995 = vmatmul.f32.gmra.mxu2 %v1825_v58 }
 0x395   :  { %v948_v23 = vpop.f32.mrf.mxu2 }
 0x396   :  { %v1827_v63 = vpop.eup %1826  ;;  %v949_v54 = vadd.f32 %v2759_v51, %v948_v23 }
 0x397   :  { %1237 = vmatmul.f32.gmra.mxu3 %v1827_v63  ;;  %v1829_v32 = vpop.eup %1828 }
 0x398   :  { %1830 = vtanh.f32 %v949_v54 }
 0x399   :  { %1832 = vtanh.f32 %v710_v0  ;;  %v731_v0 = vadd.f32 %v2669_v50, %v2828_v10 }
 0x39a   :  { %998 = vmatmul.f32.gmra.mxu2 %v1829_v32  ;;  %v1190_v1 = vpop.f32.mrf.mxu3 }
 0x39b   :  { %v1191_v4 = vadd.f32 %v2820_v49, %v1190_v1 }
 0x39d   :  { %1834 = vtanh.f32 %v1191_v4  ;;  %v951_v5 = vpop.f32.mrf.mxu2 }
 0x39e   :  { %v1831_v6 = vpop.eup %1830  ;;  %v952_v62 = vadd.f32 %v2759_v51, %v951_v5  ;;  %v2887_v5 = vpop.f32.mrf.mxu1 }
 0x39f   :  { %1240 = vmatmul.f32.gmra.mxu3 %v1831_v6  ;;  %v1833_v9 = vpop.eup %1832 }
 0x3a0   :  { %1836 = vtanh.f32 %v952_v62 }
 0x3a1   :  { %1838 = vtanh.f32 %v713_v55 }
 0x3a2   :  { %1001 = vmatmul.f32.gmra.mxu2 %v1833_v9  ;;  %v1193_v12 = vpop.f32.mrf.mxu3  ;;  %v734_v9 = vadd.f32 %v2669_v50, %v2839_v56 }
 0x3a3   :  { %v1835_v41 = vpop.eup %1834  ;;  %v1194_v13 = vadd.f32 %v2820_v49, %v1193_v12 }
 0x3a4   :  { %1446 = vst.msk [vmem:[%s3266_s9] sm:$0xff] %vm101_vm0, %v1835_v41 }
 0x3a5   :  { %1840 = vtanh.f32 %v1194_v13  ;;  %v954_v46 = vpop.f32.mrf.mxu2 }
 0x3a6   :  { %v1837_v18 = vpop.eup %1836  ;;  %v955_v19 = vadd.f32 %v2759_v51, %v954_v46 }
 0x3a7   :  { %1243 = vmatmul.f32.gmra.mxu3 %v1837_v18  ;;  %v1839_v3 = vpop.eup %1838 }
 0x3a8   :  { %1842 = vtanh.f32 %v955_v19  ;;  %v748_v19 = vpop.f32.mrf.mxu1 }
 0x3a9   :  { %1844 = vtanh.f32 %v716_v17 }
 0x3aa   :  { %1004 = vmatmul.f32.gmra.mxu2 %v1839_v3  ;;  %v1196_v22 = vpop.f32.mrf.mxu3  ;;  %v737_v3 = vadd.f32 %v2669_v50, %v2853_v20 }
 0x3ab   :  { %v1841_v8 = vpop.eup %1840  ;;  %v1197_v27 = vadd.f32 %v2820_v49, %v1196_v22 }
 0x3ac   :  { %1447 = vst.msk [vmem:[%s3266_s9 + $0x8] sm:$0xff] %vm101_vm0, %v1841_v8 }
 0x3ad   :  { %1846 = vtanh.f32 %v1197_v27  ;;  %v957_v24 = vpop.f32.mrf.mxu2 }
 0x3ae   :  { %v1843_v14 = vpop.eup %1842  ;;  %v958_v30 = vadd.f32 %v2759_v51, %v957_v24 }
 0x3af   :  { %1246 = vmatmul.f32.gmra.mxu3 %v1843_v14  ;;  %v1845_v38 = vpop.eup %1844 }
 0x3b0   :  { %1848 = vtanh.f32 %v958_v30 }
 0x3b1   :  { %1850 = vtanh.f32 %v719_v61  ;;  %v740_v61 = vadd.f32 %v2669_v50, %v2866_v60  ;;  %v746_v60 = vadd.f32 %v2669_v50, %v2887_v5 }
 0x3b2   :  { %1007 = vmatmul.f32.gmra.mxu2 %v1845_v38  ;;  %v1199_v25 = vpop.f32.mrf.mxu3  ;;  %v751_v38 = vpop.f32.mrf.mxu1 }
 0x3b3   :  { %v1847_v2 = vpop.eup %1846  ;;  %v1200_v28 = vadd.f32 %v2820_v49, %v1199_v25 }
 0x3b4   :  { %1448 = vst.msk [vmem:[%s3266_s9 + $0x10] sm:$0xff] %vm101_vm0, %v1847_v2 }
 0x3b5   :  { %1852 = vtanh.f32 %v1200_v28  ;;  %v960_v11 = vpop.f32.mrf.mxu2 }
 0x3b6   :  { %v1849_v45 = vpop.eup %1848  ;;  %v961_v40 = vadd.f32 %v2759_v51, %v960_v11 }
 0x3b7   :  { %1249 = vmatmul.f32.gmra.mxu3 %v1849_v45  ;;  %v1851_v29 = vpop.eup %1850 }
 0x3b8   :  { %1854 = vtanh.f32 %v961_v40 }
 0x3b9   :  { %1856 = vtanh.f32 %v722_v16  ;;  %v743_v16 = vadd.f32 %v2669_v50, %v2876_v15 }
 0x3ba   :  { %1010 = vmatmul.f32.gmra.mxu2 %v1851_v29  ;;  %v1202_v21 = vpop.f32.mrf.mxu3 }
 0x3bb   :  { %v1853_v53 = vpop.eup %1852  ;;  %v1203_v26 = vadd.f32 %v2820_v49, %v1202_v21  ;;  %v754_v21 = vpop.f32.mrf.mxu1 }
 0x3bc   :  { %1449 = vst.msk [vmem:[%s3266_s9 + $0x18] sm:$0xff] %vm101_vm0, %v1853_v53 }
 0x3bd   :  { %1858 = vtanh.f32 %v1203_v26  ;;  %v963_v31 = vpop.f32.mrf.mxu2 }
 0x3be   :  { %v1855_v37 = vpop.eup %1854  ;;  %v964_v33 = vadd.f32 %v2759_v51, %v963_v31 }
 0x3bf   :  { %1252 = vmatmul.f32.gmra.mxu3 %v1855_v37  ;;  %v1857_v34 = vpop.eup %1856 }
 0x3c0   :  { %1860 = vtanh.f32 %v964_v33 }
 0x3c1   :  { %1862 = vtanh.f32 %v725_v59 }
 0x3c2   :  { %1013 = vmatmul.f32.gmra.mxu2 %v1857_v34  ;;  %v1205_v36 = vpop.f32.mrf.mxu3 }
 0x3c3   :  { %v1859_v39 = vpop.eup %1858  ;;  %v1206_v42 = vadd.f32 %v2820_v49, %v1205_v36 }
 0x3c4   :  { %1450 = vst.msk [vmem:[%s3266_s9 + $0x20] sm:$0xff] %vm101_vm0, %v1859_v39 }
 0x3c5   :  { %1864 = vtanh.f32 %v1206_v42  ;;  %v966_v7 = vpop.f32.mrf.mxu2 }
 0x3c6   :  { %v1861_v44 = vpop.eup %1860  ;;  %v967_v43 = vadd.f32 %v2759_v51, %v966_v7  ;;  %v757_v7 = vpop.f32.mrf.mxu1 }
 0x3c7   :  { %1255 = vmatmul.f32.gmra.mxu3 %v1861_v44  ;;  %v1863_v47 = vpop.eup %1862 }
 0x3c8   :  { %1866 = vtanh.f32 %v967_v43 }
 0x3c9   :  { %1868 = vtanh.f32 %v728_v48 }
 0x3ca   :  { %1016 = vmatmul.f32.gmra.mxu2 %v1863_v47  ;;  %v1208_v52 = vpop.f32.mrf.mxu3  ;;  %v749_v47 = vadd.f32 %v2669_v50, %v748_v19 }
 0x3cb   :  { %v1865_v57 = vpop.eup %1864  ;;  %v1209_v58 = vadd.f32 %v2820_v49, %v1208_v52 }
 0x3cc   :  { %1451 = vst.msk [vmem:[%s3266_s9 + $0x28] sm:$0xff] %vm101_vm0, %v1865_v57 }
 0x3cd   :  { %1870 = vtanh.f32 %v1209_v58  ;;  %v969_v23 = vpop.f32.mrf.mxu2 }
 0x3ce   :  { %v1867_v63 = vpop.eup %1866  ;;  %v970_v54 = vadd.f32 %v2759_v51, %v969_v23 }
 0x3cf   :  { %1258 = vmatmul.f32.gmra.mxu3 %v1867_v63  ;;  %v1869_v35 = vpop.eup %1868 }
 0x3d0   :  { %1872 = vtanh.f32 %v970_v54  ;;  %v760_v54 = vpop.f32.mrf.mxu1 }
 0x3d1   :  { %1874 = vtanh.f32 %v731_v0 }
 0x3d2   :  { %1019 = vmatmul.f32.gmra.mxu2 %v1869_v35  ;;  %v1211_v32 = vpop.f32.mrf.mxu3  ;;  %v752_v35 = vadd.f32 %v2669_v50, %v751_v38 }
 0x3d3   :  { %v1871_v1 = vpop.eup %1870  ;;  %v1212_v4 = vadd.f32 %v2820_v49, %v1211_v32 }
 0x3d4   :  { %1452 = vst.msk [vmem:[%s3266_s9 + $0x30] sm:$0xff] %vm101_vm0, %v1871_v1 }
 0x3d5   :  { %1876 = vtanh.f32 %v1212_v4  ;;  %v972_v6 = vpop.f32.mrf.mxu2 }
 0x3d6   :  { %v1873_v62 = vpop.eup %1872  ;;  %v973_v55 = vadd.f32 %v2759_v51, %v972_v6 }
 0x3d7   :  { %1261 = vmatmul.f32.gmra.mxu3 %v1873_v62  ;;  %v1875_v10 = vpop.eup %1874 }
 0x3d8   :  { %1878 = vtanh.f32 %v973_v55 }
 0x3d9   :  { %1880 = vtanh.f32 %v734_v9  ;;  %v755_v9 = vadd.f32 %v2669_v50, %v754_v21 }
 0x3da   :  { %1022 = vmatmul.f32.gmra.mxu2 %v1875_v10  ;;  %v1214_v12 = vpop.f32.mrf.mxu3  ;;  %v763_v10 = vpop.f32.mrf.mxu1 }
 0x3db   :  { %v1877_v41 = vpop.eup %1876  ;;  %v1215_v13 = vadd.f32 %v2820_v49, %v1214_v12 }
 0x3dc   :  { %1453 = vst.msk [vmem:[%s3266_s9 + $0x38] sm:$0xff] %vm101_vm0, %v1877_v41 }
 0x3dd   :  { %1882 = vtanh.f32 %v1215_v13  ;;  %v975_v46 = vpop.f32.mrf.mxu2 }
 0x3de   :  { %v1879_v18 = vpop.eup %1878  ;;  %v976_v17 = vadd.f32 %v2759_v51, %v975_v46 }
 0x3df   :  { %1264 = vmatmul.f32.gmra.mxu3 %v1879_v18  ;;  %v1881_v22 = vpop.eup %1880 }
 0x3e0   :  { %1884 = vtanh.f32 %v976_v17 }
 0x3e1   :  { %1886 = vtanh.f32 %v737_v3  ;;  %v758_v3 = vadd.f32 %v2669_v50, %v757_v7 }
 0x3e2   :  { %1025 = vmatmul.f32.gmra.mxu2 %v1881_v22  ;;  %v1217_v8 = vpop.f32.mrf.mxu3 }
 0x3e3   :  { %v1883_v27 = vpop.eup %1882  ;;  %v1218_v56 = vadd.f32 %v2820_v49, %v1217_v8  ;;  %v766_v8 = vpop.f32.mrf.mxu1 }
 0x3e4   :  { %1454 = vst.msk [vmem:[%s3266_s9 + $0x40] sm:$0xff] %vm101_vm0, %v1883_v27 }
 0x3e5   :  { %1888 = vtanh.f32 %v1218_v56  ;;  %v978_v24 = vpop.f32.mrf.mxu2 }
 0x3e6   :  { %v1885_v14 = vpop.eup %1884  ;;  %v979_v30 = vadd.f32 %v2759_v51, %v978_v24 }
 0x3e7   :  { %1267 = vmatmul.f32.gmra.mxu3 %v1885_v14  ;;  %v1887_v25 = vpop.eup %1886 }
 0x3e8   :  { %1890 = vtanh.f32 %v979_v30 }
 0x3e9   :  { %1892 = vtanh.f32 %v740_v61  ;;  %v2965_v61 = vld [vmem:[%s3261_s4] ss:$0 sm:$0xff] }
 0x3ea   :  { %1028 = vmatmul.f32.gmra.mxu2 %v1887_v25  ;;  %v1220_v2 = vpop.f32.mrf.mxu3  ;;  %v761_v38 = vadd.f32 %v2965_v61, %v760_v54 }
 0x3eb   :  { %v1889_v28 = vpop.eup %1888  ;;  %v1221_v11 = vadd.f32 %v2820_v49, %v1220_v2 }
 0x3ec   :  { %1455 = vst.msk [vmem:[%s3266_s9 + $0x48] sm:$0xff] %vm101_vm0, %v1889_v28 }
 0x3ed   :  { %1894 = vtanh.f32 %v1221_v11  ;;  %v981_v45 = vpop.f32.mrf.mxu2 }
 0x3ee   :  { %v1891_v20 = vpop.eup %1890  ;;  %v982_v40 = vadd.f32 %v2759_v51, %v981_v45  ;;  %v769_v45 = vpop.f32.mrf.mxu1 }
 0x3ef   :  { %1270 = vmatmul.f32.gmra.mxu3 %v1891_v20  ;;  %v1893_v29 = vpop.eup %1892 }
 0x3f0   :  { %1896 = vtanh.f32 %v982_v40 }
 0x3f1   :  { %1898 = vtanh.f32 %v743_v16 }
 0x3f2   :  { %1031 = vmatmul.f32.gmra.mxu2 %v1893_v29  ;;  %v1223_v53 = vpop.f32.mrf.mxu3  ;;  %v764_v29 = vadd.f32 %v2965_v61, %v763_v10 }
 0x3f3   :  { %v1895_v26 = vpop.eup %1894  ;;  %v1224_v31 = vadd.f32 %v2820_v49, %v1223_v53 }
 0x3f4   :  { %1456 = vst.msk [vmem:[%s3266_s9 + $0x50] sm:$0xff] %vm101_vm0, %v1895_v26 }
 0x3f5   :  { %1900 = vtanh.f32 %v1224_v31  ;;  %v984_v37 = vpop.f32.mrf.mxu2 }
 0x3f6   :  { %v1897_v33 = vpop.eup %1896  ;;  %v985_v59 = vadd.f32 %v2759_v51, %v984_v37 }
 0x3f7   :  { %1273 = vmatmul.f32.gmra.mxu3 %v1897_v33  ;;  %v1899_v34 = vpop.eup %1898 }
 0x3f8   :  { %1902 = vtanh.f32 %v985_v59  ;;  %v772_v59 = vpop.f32.mrf.mxu1 }
 0x3f9   :  { %1904 = vtanh.f32 %v746_v60 }
 0x3fa   :  { %1034 = vmatmul.f32.gmra.mxu2 %v1899_v34  ;;  %v1226_v36 = vpop.f32.mrf.mxu3  ;;  %v767_v34 = vadd.f32 %v2965_v61, %v766_v8 }
 0x3fb   :  { %v1901_v39 = vpop.eup %1900  ;;  %v1227_v42 = vadd.f32 %v2820_v49, %v1226_v36 }
 0x3fc   :  { %1457 = vst.msk [vmem:[%s3266_s9 + $0x58] sm:$0xff] %vm101_vm0, %v1901_v39 }
 0x3fd   :  { %1906 = vtanh.f32 %v1227_v42  ;;  %v987_v44 = vpop.f32.mrf.mxu2 }
 0x3fe   :  { %v1903_v43 = vpop.eup %1902  ;;  %v988_v48 = vadd.f32 %v2759_v51, %v987_v44 }
 0x3ff   :  { %1276 = vmatmul.f32.gmra.mxu3 %v1903_v43  ;;  %v1905_v15 = vpop.eup %1904 }
 0x400   :  { %1908 = vtanh.f32 %v988_v48 }
 0x401   :  { %1910 = vtanh.f32 %v749_v47  ;;  %v770_v47 = vadd.f32 %v2965_v61, %v769_v45 }
 0x402   :  { %1037 = vmatmul.f32.gmra.mxu2 %v1905_v15  ;;  %v1229_v52 = vpop.f32.mrf.mxu3  ;;  %v775_v15 = vpop.f32.mrf.mxu1 }
 0x403   :  { %v1907_v57 = vpop.eup %1906  ;;  %v1230_v58 = vadd.f32 %v2820_v49, %v1229_v52  ;;  %v776_v10 = vadd.f32 %v2965_v61, %v775_v15 }
 0x404   :  { %1458 = vst.msk [vmem:[%s3266_s9 + $0x60] sm:$0xff] %vm101_vm0, %v1907_v57 }
 0x405   :  { %1912 = vtanh.f32 %v1230_v58  ;;  %v990_v23 = vpop.f32.mrf.mxu2 }
 0x406   :  { %v1909_v63 = vpop.eup %1908  ;;  %v991_v0 = vadd.f32 %v2759_v51, %v990_v23 }
 0x407   :  { %1279 = vmatmul.f32.gmra.mxu3 %v1909_v63  ;;  %v1911_v32 = vpop.eup %1910 }
 0x408   :  { %1914 = vtanh.f32 %v991_v0 }
 0x409   :  { %1916 = vtanh.f32 %v752_v35  ;;  %v773_v35 = vadd.f32 %v2965_v61, %v772_v59 }
 0x40a   :  { %1040 = vmatmul.f32.gmra.mxu2 %v1911_v32  ;;  %v1232_v1 = vpop.f32.mrf.mxu3 }
 0x40b   :  { %v1913_v4 = vpop.eup %1912  ;;  %v1233_v5 = vadd.f32 %v2820_v49, %v1232_v1  ;;  %v778_v1 = vpop.f32.mrf.mxu1 }
 0x40c   :  { %1459 = vst.msk [vmem:[%s3266_s9 + $0x68] sm:$0xff] %vm101_vm0, %v1913_v4 }
 0x40d   :  { %1918 = vtanh.f32 %v1233_v5  ;;  %v993_v6 = vpop.f32.mrf.mxu2 }
 0x40e   :  { %v1915_v62 = vpop.eup %1914  ;;  %v994_v55 = vadd.f32 %v2759_v51, %v993_v6 }
 0x40f   :  { %1282 = vmatmul.f32.gmra.mxu3 %v1915_v62  ;;  %v1917_v12 = vpop.eup %1916 }
 0x410   :  { %1920 = vtanh.f32 %v994_v55 }
 0x411   :  { %1922 = vtanh.f32 %v755_v9 }
 0x412   :  { %1043 = vmatmul.f32.gmra.mxu2 %v1917_v12  ;;  %v1235_v41 = vpop.f32.mrf.mxu3 }
 0x413   :  { %v1919_v13 = vpop.eup %1918  ;;  %v1236_v46 = vadd.f32 %v2820_v49, %v1235_v41 }
 0x414   :  { %1460 = vst.msk [vmem:[%s3266_s9 + $0x70] sm:$0xff] %vm101_vm0, %v1919_v13 }
 0x415   :  { %1924 = vtanh.f32 %v1236_v46  ;;  %v996_v18 = vpop.f32.mrf.mxu2 }
 0x416   :  { %v1921_v19 = vpop.eup %1920  ;;  %v997_v17 = vadd.f32 %v2759_v51, %v996_v18  ;;  %v781_v18 = vpop.f32.mrf.mxu1 }
 0x417   :  { %1285 = vmatmul.f32.gmra.mxu3 %v1921_v19  ;;  %v1923_v22 = vpop.eup %1922 }
 0x418   :  { %1926 = vtanh.f32 %v997_v17 }
 0x419   :  { %1928 = vtanh.f32 %v758_v3 }
 0x41a   :  { %1046 = vmatmul.f32.gmra.mxu2 %v1923_v22  ;;  %v1238_v27 = vpop.f32.mrf.mxu3  ;;  %v779_v22 = vadd.f32 %v2965_v61, %v778_v1 }
 0x41b   :  { %v1925_v56 = vpop.eup %1924  ;;  %v1239_v24 = vadd.f32 %v2820_v49, %v1238_v27 }
 0x41c   :  { %1461 = vst.msk [vmem:[%s3266_s9 + $0x78] sm:$0xff] %vm101_vm0, %v1925_v56 }
 0x41d   :  { %1930 = vtanh.f32 %v1239_v24  ;;  %v999_v14 = vpop.f32.mrf.mxu2 }
 0x41e   :  { %v1927_v30 = vpop.eup %1926  ;;  %v1000_v50 = vadd.f32 %v2759_v51, %v999_v14 }
 0x41f   :  { %1288 = vmatmul.f32.gmra.mxu3 %v1927_v30  ;;  %v1929_v25 = vpop.eup %1928 }
 0x420   :  { %1932 = vtanh.f32 %v1000_v50  ;;  %v3018_v50 = vld [vmem:[%s3263_s6] ss:$0 sm:$0xff] }
 0x421   :  { %1934 = vtanh.f32 %v761_v38 }
 0x422   :  { %1049 = vmatmul.f32.gmra.mxu2 %v1929_v25  ;;  %v1241_v2 = vpop.f32.mrf.mxu3  ;;  %v782_v25 = vadd.f32 %v2965_v61, %v781_v18 }
 0x423   :  { %v1931_v28 = vpop.eup %1930  ;;  %v1242_v11 = vadd.f32 %v2820_v49, %v1241_v2 }
 0x424   :  { %1462 = vst.msk [vmem:[%s3266_s9 + $0x80] sm:$0xff] %vm101_vm0, %v1931_v28 }
 0x425   :  { %1936 = vtanh.f32 %v1242_v11  ;;  %v1002_v20 = vpop.f32.mrf.mxu2 }
 0x426   :  { %v1933_v40 = vpop.eup %1932  ;;  %v1003_v16 = vadd.f32 %v2759_v51, %v1002_v20 }
 0x427   :  { %1291 = vmatmul.f32.gmra.mxu3 %v1933_v40  ;;  %v1935_v21 = vpop.eup %1934 }
 0x428   :  { %1938 = vtanh.f32 %v1003_v16 }
 0x429   :  { %1940 = vtanh.f32 %v764_v29 }
 0x42a   :  { %1052 = vmatmul.f32.gmra.mxu2 %v1935_v21  ;;  %v1244_v53 = vpop.f32.mrf.mxu3 }
 0x42b   :  { %v1937_v26 = vpop.eup %1936  ;;  %v1245_v31 = vadd.f32 %v2820_v49, %v1244_v53 }
 0x42c   :  { %1463 = vst.msk [vmem:[%s3266_s9 + $0x88] sm:$0xff] %vm101_vm0, %v1937_v26 }
 0x42d   :  { %1942 = vtanh.f32 %v1245_v31  ;;  %v1005_v37 = vpop.f32.mrf.mxu2 }
 0x42e   :  { %v1939_v33 = vpop.eup %1938  ;;  %v1006_v60 = vadd.f32 %v2759_v51, %v1005_v37 }
 0x42f   :  { %1294 = vmatmul.f32.gmra.mxu3 %v1939_v33  ;;  %v1941_v36 = vpop.eup %1940 }
 0x430   :  { %1944 = vtanh.f32 %v1006_v60 }
 0x431   :  { %1946 = vtanh.f32 %v767_v34 }
 0x432   :  { %1055 = vmatmul.f32.gmra.mxu2 %v1941_v36  ;;  %v1247_v39 = vpop.f32.mrf.mxu3 }
 0x433   :  { %v1943_v42 = vpop.eup %1942  ;;  %v1248_v7 = vadd.f32 %v2820_v49, %v1247_v39 }
 0x434   :  { %1464 = vst.msk [vmem:[%s3266_s9 + $0x90] sm:$0xff] %vm101_vm0, %v1943_v42 }
 0x435   :  { %1948 = vtanh.f32 %v1248_v7  ;;  %v1008_v44 = vpop.f32.mrf.mxu2 }
 0x436   :  { %v1945_v43 = vpop.eup %1944  ;;  %v1009_v48 = vadd.f32 %v2759_v51, %v1008_v44 }
 0x437   :  { %1297 = vmatmul.f32.gmra.mxu3 %v1945_v43  ;;  %v1947_v52 = vpop.eup %1946 }
 0x438   :  { %1950 = vtanh.f32 %v1009_v48 }
 0x439   :  { %1952 = vtanh.f32 %v770_v47 }
 0x43a   :  { %1058 = vmatmul.f32.gmra.mxu2 %v1947_v52  ;;  %v1250_v57 = vpop.f32.mrf.mxu3 }
 0x43b   :  { %v1949_v58 = vpop.eup %1948  ;;  %v1251_v23 = vadd.f32 %v2820_v49, %v1250_v57 }
 0x43c   :  { %1465 = vst.msk [vmem:[%s3266_s9 + $0x98] sm:$0xff] %vm101_vm0, %v1949_v58 }
 0x43d   :  { %1954 = vtanh.f32 %v1251_v23  ;;  %v1011_v63 = vpop.f32.mrf.mxu2 }
 0x43e   :  { %v1951_v54 = vpop.eup %1950  ;;  %v1012_v0 = vadd.f32 %v2759_v51, %v1011_v63 }
 0x43f   :  { %1300 = vmatmul.f32.gmra.mxu3 %v1951_v54  ;;  %v1953_v32 = vpop.eup %1952 }
 0x440   :  { %1956 = vtanh.f32 %v1012_v0 }
 0x441   :  { %1958 = vtanh.f32 %v773_v35 }
 0x442   :  { %1061 = vmatmul.f32.gmra.mxu2 %v1953_v32  ;;  %v1253_v4 = vpop.f32.mrf.mxu3 }
 0x443   :  { %v1955_v5 = vpop.eup %1954  ;;  %v1254_v6 = vadd.f32 %v2820_v49, %v1253_v4 }
 0x444   :  { %1466 = vst.msk [vmem:[%s3266_s9 + $0xa0] sm:$0xff] %vm101_vm0, %v1955_v5 }
 0x445   :  { %1960 = vtanh.f32 %v1254_v6  ;;  %v1014_v62 = vpop.f32.mrf.mxu2 }
 0x446   :  { %v1957_v55 = vpop.eup %1956  ;;  %v1015_v9 = vadd.f32 %v2759_v51, %v1014_v62 }
 0x447   :  { %1303 = vmatmul.f32.gmra.mxu3 %v1957_v55  ;;  %v1959_v12 = vpop.eup %1958 }
 0x448   :  { %1962 = vtanh.f32 %v1015_v9 }
 0x449   :  { %1964 = vtanh.f32 %v776_v10 }
 0x44a   :  { %1064 = vmatmul.f32.gmra.mxu2 %v1959_v12  ;;  %v1256_v41 = vpop.f32.mrf.mxu3 }
 0x44b   :  { %v1961_v13 = vpop.eup %1960  ;;  %v1257_v46 = vadd.f32 %v2820_v49, %v1256_v41 }
 0x44c   :  { %1467 = vst.msk [vmem:[%s3266_s9 + $0xa8] sm:$0xff] %vm101_vm0, %v1961_v13 }
 0x44d   :  { %1966 = vtanh.f32 %v1257_v46  ;;  %v1017_v19 = vpop.f32.mrf.mxu2 }
 0x44e   :  { %v1963_v17 = vpop.eup %1962  ;;  %v1018_v3 = vadd.f32 %v2759_v51, %v1017_v19  ;;  %v784_v51 = vpop.f32.mrf.mxu1 }
 0x44f   :  { %1306 = vmatmul.f32.gmra.mxu3 %v1963_v17  ;;  %v1965_v8 = vpop.eup %1964  ;;  %v785_v29 = vadd.f32 %v2965_v61, %v784_v51 }
 0x450   :  { %1968 = vtanh.f32 %v1018_v3 }
 0x451   :  { %1970 = vtanh.f32 %v779_v22 }
 0x452   :  { %1067 = vmatmul.f32.gmra.mxu2 %v1965_v8  ;;  %v1259_v27 = vpop.f32.mrf.mxu3 }
 0x453   :  { %v1967_v56 = vpop.eup %1966  ;;  %v1260_v24 = vadd.f32 %v2820_v49, %v1259_v27 }
 0x454   :  { %1468 = vst.msk [vmem:[%s3266_s9 + $0xb0] sm:$0xff] %vm101_vm0, %v1967_v56 }
 0x455   :  { %1972 = vtanh.f32 %v1260_v24  ;;  %v1020_v14 = vpop.f32.mrf.mxu2 }
 0x456   :  { %v1969_v30 = vpop.eup %1968  ;;  %v1021_v38 = vadd.f32 %v3018_v50, %v1020_v14  ;;  %v787_v21 = vpop.f32.mrf.mxu1 }
 0x457   :  { %1309 = vmatmul.f32.gmra.mxu3 %v1969_v30  ;;  %v1971_v2 = vpop.eup %1970  ;;  %v788_v34 = vadd.f32 %v2965_v61, %v787_v21 }
 0x458   :  { %1974 = vtanh.f32 %v1021_v38 }
 0x459   :  { %1976 = vtanh.f32 %v782_v25 }
 0x45a   :  { %1070 = vmatmul.f32.gmra.mxu2 %v1971_v2  ;;  %v1262_v28 = vpop.f32.mrf.mxu3 }
 0x45b   :  { %v1973_v11 = vpop.eup %1972  ;;  %v1263_v45 = vadd.f32 %v2820_v49, %v1262_v28 }
 0x45c   :  { %1469 = vst.msk [vmem:[%s3266_s9 + $0xb8] sm:$0xff] %vm101_vm0, %v1973_v11 }
 0x45d   :  { %1978 = vtanh.f32 %v1263_v45  ;;  %v1023_v20 = vpop.f32.mrf.mxu2 }
 0x45e   :  { %v1975_v40 = vpop.eup %1974  ;;  %v1024_v16 = vadd.f32 %v3018_v50, %v1023_v20  ;;  %v790_v39 = vpop.f32.mrf.mxu1 }
 0x45f   :  { %1312 = vmatmul.f32.gmra.mxu3 %v1975_v40  ;;  %v1977_v53 = vpop.eup %1976  ;;  %v791_v15 = vadd.f32 %v2965_v61, %v790_v39 }
 0x460   :  { %1980 = vtanh.f32 %v1024_v16 }
 0x461   :  { %1982 = vtanh.f32 %v785_v29 }
 0x462   :  { %1073 = vmatmul.f32.gmra.mxu2 %v1977_v53  ;;  %v1265_v26 = vpop.f32.mrf.mxu3 }
 0x463   :  { %v1979_v31 = vpop.eup %1978  ;;  %v1266_v37 = vadd.f32 %v2820_v49, %v1265_v26 }
 0x464   :  { %1470 = vst.msk [vmem:[%s3266_s9 + $0xc0] sm:$0xff] %vm101_vm0, %v1979_v31 }
 0x465   :  { %1984 = vtanh.f32 %v1266_v37  ;;  %v1026_v33 = vpop.f32.mrf.mxu2 }
 0x466   :  { %v1981_v59 = vpop.eup %1980  ;;  %v1027_v60 = vadd.f32 %v3018_v50, %v1026_v33  ;;  %v793_v63 = vpop.f32.mrf.mxu1 }
 0x467   :  { %1315 = vmatmul.f32.gmra.mxu3 %v1981_v59  ;;  %v1983_v36 = vpop.eup %1982  ;;  %v794_v32 = vadd.f32 %v2965_v61, %v793_v63 }
 0x468   :  { %1986 = vtanh.f32 %v1027_v60 }
 0x469   :  { %1988 = vtanh.f32 %v788_v34 }
 0x46a   :  { %1076 = vmatmul.f32.gmra.mxu2 %v1983_v36  ;;  %v1268_v42 = vpop.f32.mrf.mxu3 }
 0x46b   :  { %v1985_v7 = vpop.eup %1984  ;;  %v1269_v44 = vadd.f32 %v2820_v49, %v1268_v42 }
 0x46c   :  { %1471 = vst.msk [vmem:[%s3266_s9 + $0xc8] sm:$0xff] %vm101_vm0, %v1985_v7 }
 0x46d   :  { %1990 = vtanh.f32 %v1269_v44  ;;  %v1029_v43 = vpop.f32.mrf.mxu2 }
 0x46e   :  { %v1987_v48 = vpop.eup %1986  ;;  %v1030_v47 = vadd.f32 %v3018_v50, %v1029_v43 }
 0x46f   :  { %1318 = vmatmul.f32.gmra.mxu3 %v1987_v48  ;;  %v1989_v52 = vpop.eup %1988 }
 0x470   :  { %1992 = vtanh.f32 %v1030_v47 }
 0x471   :  { %1994 = vtanh.f32 %v791_v15 }
 0x472   :  { %1079 = vmatmul.f32.gmra.mxu2 %v1989_v52  ;;  %v1271_v57 = vpop.f32.mrf.mxu3 }
 0x473   :  { %v1991_v58 = vpop.eup %1990  ;;  %v1272_v23 = vadd.f32 %v2820_v49, %v1271_v57 }
 0x474   :  { %1472 = vst.msk [vmem:[%s3266_s9 + $0xd0] sm:$0xff] %vm101_vm0, %v1991_v58 }
 0x475   :  { %1996 = vtanh.f32 %v1272_v23  ;;  %v1032_v54 = vpop.f32.mrf.mxu2 }
 0x476   :  { %v1993_v0 = vpop.eup %1992  ;;  %v1033_v35 = vadd.f32 %v3018_v50, %v1032_v54  ;;  %v3107_v54 = vld [vmem:[%s3265_s8] ss:$0 sm:$0xff] }
 0x477   :  { %1321 = vmatmul.f32.gmra.mxu3 %v1993_v0  ;;  %v1995_v1 = vpop.eup %1994 }
 0x478   :  { %1998 = vtanh.f32 %v1033_v35 }
 0x479   :  { %2000 = vtanh.f32 %v794_v32 }
 0x47a   :  { %1082 = vmatmul.f32.gmra.mxu2 %v1995_v1  ;;  %v1274_v4 = vpop.f32.mrf.mxu3 }
 0x47b   :  { %v1997_v5 = vpop.eup %1996  ;;  %v1275_v6 = vadd.f32 %v2820_v49, %v1274_v4 }
 0x47c   :  { %1473 = vst.msk [vmem:[%s3266_s9 + $0xd8] sm:$0xff] %vm101_vm0, %v1997_v5 }
 0x47d   :  { %2002 = vtanh.f32 %v1275_v6  ;;  %v1035_v62 = vpop.f32.mrf.mxu2 }
 0x47e   :  { %v1999_v55 = vpop.eup %1998  ;;  %v1036_v9 = vadd.f32 %v3018_v50, %v1035_v62 }
 0x47f   :  { %1324 = vmatmul.f32.gmra.mxu3 %v1999_v55  ;;  %v2001_v61 = vpop.eup %2000 }
 0x480   :  { %2004 = vtanh.f32 %v1036_v9 }
 0x482   :  { %1085 = vmatmul.f32.gmra.mxu2 %v2001_v61  ;;  %v1277_v10 = vpop.f32.mrf.mxu3 }
 0x483   :  { %v2003_v12 = vpop.eup %2002  ;;  %v1278_v41 = vadd.f32 %v2820_v49, %v1277_v10 }
 0x484   :  { %1474 = vst.msk [vmem:[%s3266_s9 + $0xe0] sm:$0xff] %vm101_vm0, %v2003_v12 }
 0x485   :  { %2006 = vtanh.f32 %v1278_v41  ;;  %v1038_v13 = vpop.f32.mrf.mxu2 }
 0x486   :  { %v2005_v46 = vpop.eup %2004  ;;  %v1039_v18 = vadd.f32 %v3018_v50, %v1038_v13 }
 0x487   :  { %1327 = vmatmul.f32.gmra.mxu3 %v2005_v46 }
 0x488   :  { %2008 = vtanh.f32 %v1039_v18 }
 0x48a   :  { %v1280_v19 = vpop.f32.mrf.mxu3 }
 0x48b   :  { %v2007_v17 = vpop.eup %2006  ;;  %v1281_v3 = vadd.f32 %v2820_v49, %v1280_v19 }
 0x48c   :  { %1475 = vst.msk [vmem:[%s3266_s9 + $0xe8] sm:$0xff] %vm101_vm0, %v2007_v17 }
 0x48d   :  { %2010 = vtanh.f32 %v1281_v3  ;;  %v1041_v22 = vpop.f32.mrf.mxu2 }
 0x48e   :  { %v2009_v8 = vpop.eup %2008  ;;  %v1042_v27 = vadd.f32 %v3018_v50, %v1041_v22 }
 0x48f   :  { %1330 = vmatmul.f32.gmra.mxu3 %v2009_v8 }
 0x490   :  { %2012 = vtanh.f32 %v1042_v27 }
 0x492   :  { %v1283_v56 = vpop.f32.mrf.mxu3 }
 0x493   :  { %v2011_v24 = vpop.eup %2010  ;;  %v1284_v14 = vadd.f32 %v2820_v49, %v1283_v56 }
 0x494   :  { %1476 = vst.msk [vmem:[%s3266_s9 + $0xf0] sm:$0xff] %vm101_vm0, %v2011_v24 }
 0x495   :  { %2014 = vtanh.f32 %v1284_v14  ;;  %v1044_v30 = vpop.f32.mrf.mxu2 }
 0x496   :  { %v2013_v51 = vpop.eup %2012  ;;  %v1045_v38 = vadd.f32 %v3018_v50, %v1044_v30 }
 0x497   :  { %1333 = vmatmul.f32.gmra.mxu3 %v2013_v51 }
 0x498   :  { %2016 = vtanh.f32 %v1045_v38 }
 0x49a   :  { %v1286_v25 = vpop.f32.mrf.mxu3 }
 0x49b   :  { %v2015_v2 = vpop.eup %2014  ;;  %v1287_v28 = vadd.f32 %v2820_v49, %v1286_v25 }
 0x49c   :  { %1477 = vst.msk [vmem:[%s3266_s9 + $0xf8] sm:$0xff] %vm101_vm0, %v2015_v2 }
 0x49d   :  { %2018 = vtanh.f32 %v1287_v28  ;;  %v1047_v11 = vpop.f32.mrf.mxu2 }
 0x49e   :  { %v2017_v45 = vpop.eup %2016  ;;  %v1048_v20 = vadd.f32 %v3018_v50, %v1047_v11 }
 0x49f   :  { %1336 = vmatmul.f32.gmra.mxu3 %v2017_v45 }
 0x4a0   :  { %2020 = vtanh.f32 %v1048_v20 }
 0x4a2   :  { %v1289_v40 = vpop.f32.mrf.mxu3 }
 0x4a3   :  { %v2019_v16 = vpop.eup %2018  ;;  %v1290_v29 = vadd.f32 %v2820_v49, %v1289_v40 }
 0x4a4   :  { %1478 = vst.msk [vmem:[%s3266_s9 + $0x100] sm:$0xff] %vm101_vm0, %v2019_v16 }
 0x4a5   :  { %2022 = vtanh.f32 %v1290_v29  ;;  %v1050_v21 = vpop.f32.mrf.mxu2 }
 0x4a6   :  { %v2021_v53 = vpop.eup %2020  ;;  %v1051_v26 = vadd.f32 %v3018_v50, %v1050_v21 }
 0x4a7   :  { %1339 = vmatmul.f32.gmra.mxu3 %v2021_v53 }
 0x4a8   :  { %2024 = vtanh.f32 %v1051_v26 }
 0x4aa   :  { %v1292_v31 = vpop.f32.mrf.mxu3 }
 0x4ab   :  { %v2023_v37 = vpop.eup %2022  ;;  %v1293_v33 = vadd.f32 %v2820_v49, %v1292_v31 }
 0x4ac   :  { %1479 = vst.msk [vmem:[%s3266_s9 + $0x108] sm:$0xff] %vm101_vm0, %v2023_v37 }
 0x4ad   :  { %2026 = vtanh.f32 %v1293_v33  ;;  %v1053_v59 = vpop.f32.mrf.mxu2 }
 0x4ae   :  { %v2025_v60 = vpop.eup %2024  ;;  %v1054_v34 = vadd.f32 %v3018_v50, %v1053_v59 }
 0x4af   :  { %1342 = vmatmul.f32.gmra.mxu3 %v2025_v60 }
 0x4b0   :  { %2028 = vtanh.f32 %v1054_v34 }
 0x4b2   :  { %v1295_v36 = vpop.f32.mrf.mxu3 }
 0x4b3   :  { %v2027_v39 = vpop.eup %2026  ;;  %v1296_v42 = vadd.f32 %v2820_v49, %v1295_v36 }
 0x4b4   :  { %1480 = vst.msk [vmem:[%s3266_s9 + $0x110] sm:$0xff] %vm101_vm0, %v2027_v39 }
 0x4b5   :  { %2030 = vtanh.f32 %v1296_v42  ;;  %v1056_v7 = vpop.f32.mrf.mxu2 }
 0x4b6   :  { %v2029_v44 = vpop.eup %2028  ;;  %v1057_v43 = vadd.f32 %v3018_v50, %v1056_v7 }
 0x4b7   :  { %1345 = vmatmul.f32.gmra.mxu3 %v2029_v44 }
 0x4b8   :  { %2032 = vtanh.f32 %v1057_v43 }
 0x4ba   :  { %v1298_v48 = vpop.f32.mrf.mxu3 }
 0x4bb   :  { %v2031_v47 = vpop.eup %2030  ;;  %v1299_v15 = vadd.f32 %v2820_v49, %v1298_v48 }
 0x4bc   :  { %1481 = vst.msk [vmem:[%s3266_s9 + $0x118] sm:$0xff] %vm101_vm0, %v2031_v47 }
 0x4bd   :  { %2034 = vtanh.f32 %v1299_v15  ;;  %v1059_v52 = vpop.f32.mrf.mxu2 }
 0x4be   :  { %v2033_v57 = vpop.eup %2032  ;;  %v1060_v58 = vadd.f32 %v3018_v50, %v1059_v52 }
 0x4bf   :  { %1348 = vmatmul.f32.gmra.mxu3 %v2033_v57 }
 0x4c0   :  { %2036 = vtanh.f32 %v1060_v58 }
 0x4c2   :  { %v1301_v23 = vpop.f32.mrf.mxu3 }
 0x4c3   :  { %v2035_v63 = vpop.eup %2034  ;;  %v1302_v49 = vadd.f32 %v3107_v54, %v1301_v23 }
 0x4c4   :  { %1482 = vst.msk [vmem:[%s3266_s9 + $0x120] sm:$0xff] %vm101_vm0, %v2035_v63 }
 0x4c5   :  { %2038 = vtanh.f32 %v1302_v49  ;;  %v1062_v0 = vpop.f32.mrf.mxu2 }
 0x4c6   :  { %v2037_v35 = vpop.eup %2036  ;;  %v1063_v32 = vadd.f32 %v3018_v50, %v1062_v0 }
 0x4c7   :  { %1351 = vmatmul.f32.gmra.mxu3 %v2037_v35 }
 0x4c8   :  { %2040 = vtanh.f32 %v1063_v32 }
 0x4ca   :  { %v1304_v1 = vpop.f32.mrf.mxu3 }
 0x4cb   :  { %v2039_v4 = vpop.eup %2038  ;;  %v1305_v5 = vadd.f32 %v3107_v54, %v1304_v1 }
 0x4cc   :  { %1483 = vst.msk [vmem:[%s3266_s9 + $0x128] sm:$0xff] %vm101_vm0, %v2039_v4 }
 0x4cd   :  { %2042 = vtanh.f32 %v1305_v5  ;;  %v1065_v6 = vpop.f32.mrf.mxu2 }
 0x4ce   :  { %v2041_v62 = vpop.eup %2040  ;;  %v1066_v55 = vadd.f32 %v3018_v50, %v1065_v6 }
 0x4cf   :  { %1354 = vmatmul.f32.gmra.mxu3 %v2041_v62 }
 0x4d0   :  { %2044 = vtanh.f32 %v1066_v55 }
 0x4d2   :  { %v1307_v9 = vpop.f32.mrf.mxu3 }
 0x4d3   :  { %v2043_v61 = vpop.eup %2042  ;;  %v1308_v10 = vadd.f32 %v3107_v54, %v1307_v9 }
 0x4d4   :  { %1484 = vst.msk [vmem:[%s3266_s9 + $0x130] sm:$0xff] %vm101_vm0, %v2043_v61 }
 0x4d5   :  { %2046 = vtanh.f32 %v1308_v10  ;;  %v1068_v12 = vpop.f32.mrf.mxu2 }
 0x4d6   :  { %v2045_v41 = vpop.eup %2044  ;;  %v1069_v13 = vadd.f32 %v3018_v50, %v1068_v12 }
 0x4d7   :  { %1357 = vmatmul.f32.gmra.mxu3 %v2045_v41 }
 0x4d8   :  { %2048 = vtanh.f32 %v1069_v13 }
 0x4da   :  { %v1310_v46 = vpop.f32.mrf.mxu3 }
 0x4db   :  { %v2047_v18 = vpop.eup %2046  ;;  %v1311_v19 = vadd.f32 %v3107_v54, %v1310_v46 }
 0x4dc   :  { %1485 = vst.msk [vmem:[%s3266_s9 + $0x138] sm:$0xff] %vm101_vm0, %v2047_v18 }
 0x4dd   :  { %2050 = vtanh.f32 %v1311_v19  ;;  %v1071_v17 = vpop.f32.mrf.mxu2 }
 0x4de   :  { %v2049_v3 = vpop.eup %2048  ;;  %v1072_v22 = vadd.f32 %v3018_v50, %v1071_v17 }
 0x4df   :  { %1360 = vmatmul.f32.gmra.mxu3 %v2049_v3 }
 0x4e0   :  { %2052 = vtanh.f32 %v1072_v22 }
 0x4e2   :  { %v1313_v8 = vpop.f32.mrf.mxu3 }
 0x4e3   :  { %v2051_v27 = vpop.eup %2050  ;;  %v1314_v56 = vadd.f32 %v3107_v54, %v1313_v8 }
 0x4e4   :  { %1486 = vst.msk [vmem:[%s3266_s9 + $0x140] sm:$0xff] %vm101_vm0, %v2051_v27 }
 0x4e5   :  { %2054 = vtanh.f32 %v1314_v56  ;;  %v1074_v24 = vpop.f32.mrf.mxu2 }
 0x4e6   :  { %v2053_v14 = vpop.eup %2052  ;;  %v1075_v30 = vadd.f32 %v3018_v50, %v1074_v24 }
 0x4e7   :  { %1363 = vmatmul.f32.gmra.mxu3 %v2053_v14 }
 0x4e8   :  { %2056 = vtanh.f32 %v1075_v30 }
 0x4ea   :  { %v1316_v51 = vpop.f32.mrf.mxu3 }
 0x4eb   :  { %v2055_v38 = vpop.eup %2054  ;;  %v1317_v25 = vadd.f32 %v3107_v54, %v1316_v51 }
 0x4ec   :  { %1487 = vst.msk [vmem:[%s3266_s9 + $0x148] sm:$0xff] %vm101_vm0, %v2055_v38 }
 0x4ed   :  { %2058 = vtanh.f32 %v1317_v25  ;;  %v1077_v2 = vpop.f32.mrf.mxu2 }
 0x4ee   :  { %v2057_v28 = vpop.eup %2056  ;;  %v1078_v11 = vadd.f32 %v3018_v50, %v1077_v2 }
 0x4ef   :  { %1366 = vmatmul.f32.gmra.mxu3 %v2057_v28 }
 0x4f0   :  { %2060 = vtanh.f32 %v1078_v11 }
 0x4f2   :  { %v1319_v45 = vpop.f32.mrf.mxu3 }
 0x4f3   :  { %v2059_v20 = vpop.eup %2058  ;;  %v1320_v40 = vadd.f32 %v3107_v54, %v1319_v45 }
 0x4f4   :  { %1488 = vst.msk [vmem:[%s3266_s9 + $0x150] sm:$0xff] %vm101_vm0, %v2059_v20 }
 0x4f5   :  { %2062 = vtanh.f32 %v1320_v40  ;;  %v1080_v16 = vpop.f32.mrf.mxu2 }
 0x4f6   :  { %v2061_v29 = vpop.eup %2060  ;;  %v1081_v21 = vadd.f32 %v3018_v50, %v1080_v16 }
 0x4f7   :  { %1369 = vmatmul.f32.gmra.mxu3 %v2061_v29 }
 0x4f8   :  { %2064 = vtanh.f32 %v1081_v21 }
 0x4fa   :  { %v1322_v53 = vpop.f32.mrf.mxu3 }
 0x4fb   :  { %v2063_v26 = vpop.eup %2062  ;;  %v1323_v31 = vadd.f32 %v3107_v54, %v1322_v53 }
 0x4fc   :  { %1489 = vst.msk [vmem:[%s3266_s9 + $0x158] sm:$0xff] %vm101_vm0, %v2063_v26 }
 0x4fd   :  { %2066 = vtanh.f32 %v1323_v31  ;;  %v1083_v37 = vpop.f32.mrf.mxu2 }
 0x4fe   :  { %v2065_v33 = vpop.eup %2064  ;;  %v1084_v59 = vadd.f32 %v3018_v50, %v1083_v37 }
 0x4ff   :  { %1372 = vmatmul.f32.gmra.mxu3 %v2065_v33 }
 0x500   :  { %2068 = vtanh.f32 %v1084_v59 }
 0x502   :  { %v1325_v60 = vpop.f32.mrf.mxu3 }
 0x503   :  { %v2067_v34 = vpop.eup %2066  ;;  %v1326_v36 = vadd.f32 %v3107_v54, %v1325_v60 }
 0x504   :  { %1490 = vst.msk [vmem:[%s3266_s9 + $0x160] sm:$0xff] %vm101_vm0, %v2067_v34 }
 0x505   :  { %2070 = vtanh.f32 %v1326_v36  ;;  %v1086_v39 = vpop.f32.mrf.mxu2 }
 0x506   :  { %v2069_v42 = vpop.eup %2068  ;;  %v1087_v7 = vadd.f32 %v3018_v50, %v1086_v39 }
 0x507   :  { %1375 = vmatmul.f32.gmra.mxu3 %v2069_v42 }
 0x508   :  { %2072 = vtanh.f32 %v1087_v7 }
 0x50a   :  { %v1328_v44 = vpop.f32.mrf.mxu3 }
 0x50b   :  { %v2071_v43 = vpop.eup %2070  ;;  %v1329_v48 = vadd.f32 %v3107_v54, %v1328_v44 }
 0x50c   :  { %1491 = vst.msk [vmem:[%s3266_s9 + $0x168] sm:$0xff] %vm101_vm0, %v2071_v43 }
 0x50d   :  { %2074 = vtanh.f32 %v1329_v48 }
 0x50e   :  { %v2073_v47 = vpop.eup %2072 }
 0x50f   :  { %1378 = vmatmul.f32.gmra.mxu3 %v2073_v47 }
 0x512   :  { %v1331_v15 = vpop.f32.mrf.mxu3 }
 0x513   :  { %v2075_v52 = vpop.eup %2074  ;;  %v1332_v57 = vadd.f32 %v3107_v54, %v1331_v15 }
 0x514   :  { %1492 = vst.msk [vmem:[%s3266_s9 + $0x170] sm:$0xff] %vm101_vm0, %v2075_v52 }
 0x515   :  { %2076 = vtanh.f32 %v1332_v57 }
 0x51a   :  { %v1334_v50 = vpop.f32.mrf.mxu3 }
 0x51b   :  { %v2077_v58 = vpop.eup %2076  ;;  %v1335_v23 = vadd.f32 %v3107_v54, %v1334_v50 }
 0x51c   :  { %1493 = vst.msk [vmem:[%s3266_s9 + $0x178] sm:$0xff] %vm101_vm0, %v2077_v58 }
 0x51d   :  { %2078 = vtanh.f32 %v1335_v23 }
 0x522   :  { %v1337_v63 = vpop.f32.mrf.mxu3 }
 0x523   :  { %v2079_v49 = vpop.eup %2078  ;;  %v1338_v0 = vadd.f32 %v3107_v54, %v1337_v63 }
 0x524   :  { %1494 = vst.msk [vmem:[%s3266_s9 + $0x180] sm:$0xff] %vm101_vm0, %v2079_v49 }
 0x525   :  { %2080 = vtanh.f32 %v1338_v0 }
 0x52a   :  { %v1340_v35 = vpop.f32.mrf.mxu3 }
 0x52b   :  { %v2081_v32 = vpop.eup %2080  ;;  %v1341_v1 = vadd.f32 %v3107_v54, %v1340_v35 }
 0x52c   :  { %1495 = vst.msk [vmem:[%s3266_s9 + $0x188] sm:$0xff] %vm101_vm0, %v2081_v32 }
 0x52d   :  { %2082 = vtanh.f32 %v1341_v1 }
 0x532   :  { %v1343_v4 = vpop.f32.mrf.mxu3 }
 0x533   :  { %v2083_v5 = vpop.eup %2082  ;;  %v1344_v6 = vadd.f32 %v3107_v54, %v1343_v4 }
 0x534   :  { %1496 = vst.msk [vmem:[%s3266_s9 + $0x190] sm:$0xff] %vm101_vm0, %v2083_v5 }
 0x535   :  { %2084 = vtanh.f32 %v1344_v6 }
 0x53a   :  { %v1346_v62 = vpop.f32.mrf.mxu3 }
 0x53b   :  { %v2085_v55 = vpop.eup %2084  ;;  %v1347_v9 = vadd.f32 %v3107_v54, %v1346_v62 }
 0x53c   :  { %1497 = vst.msk [vmem:[%s3266_s9 + $0x198] sm:$0xff] %vm101_vm0, %v2085_v55 }
 0x53d   :  { %2086 = vtanh.f32 %v1347_v9 }
 0x542   :  { %v1349_v61 = vpop.f32.mrf.mxu3 }
 0x543   :  { %v2087_v10 = vpop.eup %2086  ;;  %v1350_v12 = vadd.f32 %v3107_v54, %v1349_v61 }
 0x544   :  { %1498 = vst.msk [vmem:[%s3266_s9 + $0x1a0] sm:$0xff] %vm101_vm0, %v2087_v10 }
 0x545   :  { %2088 = vtanh.f32 %v1350_v12 }
 0x54a   :  { %v1352_v41 = vpop.f32.mrf.mxu3 }
 0x54b   :  { %v2089_v13 = vpop.eup %2088  ;;  %v1353_v46 = vadd.f32 %v3107_v54, %v1352_v41 }
 0x54c   :  { %1499 = vst.msk [vmem:[%s3266_s9 + $0x1a8] sm:$0xff] %vm101_vm0, %v2089_v13 }
 0x54d   :  { %2090 = vtanh.f32 %v1353_v46 }
 0x552   :  { %v1355_v18 = vpop.f32.mrf.mxu3 }
 0x553   :  { %v2091_v19 = vpop.eup %2090  ;;  %v1356_v17 = vadd.f32 %v3107_v54, %v1355_v18 }
 0x554   :  { %1500 = vst.msk [vmem:[%s3266_s9 + $0x1b0] sm:$0xff] %vm101_vm0, %v2091_v19 }
 0x555   :  { %2092 = vtanh.f32 %v1356_v17 }
 0x55a   :  { %v1358_v3 = vpop.f32.mrf.mxu3 }
 0x55b   :  { %v2093_v22 = vpop.eup %2092  ;;  %v1359_v8 = vadd.f32 %v3107_v54, %v1358_v3 }
 0x55c   :  { %1501 = vst.msk [vmem:[%s3266_s9 + $0x1b8] sm:$0xff] %vm101_vm0, %v2093_v22 }
 0x55d   :  { %2094 = vtanh.f32 %v1359_v8 }
 0x562   :  { %v1361_v27 = vpop.f32.mrf.mxu3 }
 0x563   :  { %v2095_v56 = vpop.eup %2094  ;;  %v1362_v24 = vadd.f32 %v3107_v54, %v1361_v27 }
 0x564   :  { %1502 = vst.msk [vmem:[%s3266_s9 + $0x1c0] sm:$0xff] %vm101_vm0, %v2095_v56 }
 0x565   :  { %2096 = vtanh.f32 %v1362_v24 }
 0x56a   :  { %v1364_v14 = vpop.f32.mrf.mxu3 }
 0x56b   :  { %v2097_v30 = vpop.eup %2096  ;;  %v1365_v51 = vadd.f32 %v3107_v54, %v1364_v14 }
 0x56c   :  { %1503 = vst.msk [vmem:[%s3266_s9 + $0x1c8] sm:$0xff] %vm101_vm0, %v2097_v30 }
 0x56d   :  { %2098 = vtanh.f32 %v1365_v51 }
 0x572   :  { %v1367_v38 = vpop.f32.mrf.mxu3 }
 0x573   :  { %v2099_v25 = vpop.eup %2098  ;;  %v1368_v2 = vadd.f32 %v3107_v54, %v1367_v38 }
 0x574   :  { %1504 = vst.msk [vmem:[%s3266_s9 + $0x1d0] sm:$0xff] %vm101_vm0, %v2099_v25 }
 0x575   :  { %2100 = vtanh.f32 %v1368_v2 }
 0x57a   :  { %v1370_v28 = vpop.f32.mrf.mxu3 }
 0x57b   :  { %v2101_v11 = vpop.eup %2100  ;;  %v1371_v45 = vadd.f32 %v3107_v54, %v1370_v28 }
 0x57c   :  { %1505 = vst.msk [vmem:[%s3266_s9 + $0x1d8] sm:$0xff] %vm101_vm0, %v2101_v11 }
 0x57d   :  { %2102 = vtanh.f32 %v1371_v45 }
 0x582   :  { %v1373_v20 = vpop.f32.mrf.mxu3 }
 0x583   :  { %v2103_v40 = vpop.eup %2102  ;;  %v1374_v16 = vadd.f32 %v3107_v54, %v1373_v20 }
 0x584   :  { %1506 = vst.msk [vmem:[%s3266_s9 + $0x1e0] sm:$0xff] %vm101_vm0, %v2103_v40 }
 0x585   :  { %2104 = vtanh.f32 %v1374_v16 }
 0x58a   :  { %v1376_v29 = vpop.f32.mrf.mxu3 }
 0x58b   :  { %v2105_v21 = vpop.eup %2104  ;;  %v1377_v53 = vadd.f32 %v3107_v54, %v1376_v29 }
 0x58c   :  { %1507 = vst.msk [vmem:[%s3266_s9 + $0x1e8] sm:$0xff] %vm101_vm0, %v2105_v21 }
 0x58d   :  { %2106 = vtanh.f32 %v1377_v53 }
 0x592   :  { %v1379_v26 = vpop.f32.mrf.mxu3 }
 0x593   :  { %v2107_v31 = vpop.eup %2106  ;;  %v1380_v37 = vadd.f32 %v3107_v54, %v1379_v26 }
 0x594   :  { %1508 = vst.msk [vmem:[%s3266_s9 + $0x1f0] sm:$0xff] %vm101_vm0, %v2107_v31 }
 0x595   :  { %2108 = vtanh.f32 %v1380_v37 }
 0x59b   :  { %v2109_v33 = vpop.eup %2108 }
 0x59c   :  { %1509 = vst.msk [vmem:[%s3266_s9 + $0x1f8] sm:$0xff] %vm101_vm0, %v2109_v33 }

</bundles_post_ra>
